<compile_context>
chip_gen: v5e
topology: v5e:2x2
jax: 0.10.0
libtpu: 0.0.40
codegen_flags: <defaults>
</compile_context>

<pallas_src>
import functools

import jax
import jax.numpy as jnp
from jax import lax
from jax.experimental import pallas as pl
from jax.experimental.pallas import tpu as pltpu


# Architecture constants of the PyTorch module.
K1, S1, C1 = 8, 4, 32
K2, S2, C2 = 4, 2, 64
K3, S3, C3 = 3, 1, 64
FC_DIM = 512


def _conv_out(n, k, s):
    return (n - k) // s + 1


# ----------------------------------------------------------------------------
# Logical (unpacked) parameters: bf16 weights, f32 biases.
# ----------------------------------------------------------------------------
def init_params(key, in_channels, spatial, n_actions):
    oh1 = _conv_out(spatial, K1, S1)
    oh2 = _conv_out(oh1, K2, S2)
    oh3 = _conv_out(oh2, K3, S3)
    conv_out_size = C3 * oh3 * oh3

    def u(k, shape, fan):
        bound = 1.0 / (fan ** 0.5)
        return jax.random.uniform(k, shape, jnp.float32, -bound, bound)

    keys = jax.random.split(key, 12)
    p = {}
    fan = in_channels * K1 * K1
    p["w1"] = u(keys[0], (K1 * K1 * in_channels, C1), fan).astype(jnp.bfloat16)  # rows (kh,kw,cin)
    p["b1"] = u(keys[1], (1, C1), fan)
    fan = C1 * K2 * K2
    p["w2"] = u(keys[2], (K2 * K2 * C1, C2), fan).astype(jnp.bfloat16)           # rows (kh,kw,cin)
    p["b2"] = u(keys[3], (1, C2), fan)
    fan = C2 * K3 * K3
    p["w3"] = u(keys[4], (K3 * K3 * C2, C3), fan).astype(jnp.bfloat16)           # rows (kh,kw,cin)
    p["b3"] = u(keys[5], (1, C3), fan)
    fan = conv_out_size
    p["wfc"] = u(keys[6], (conv_out_size, FC_DIM), fan).astype(jnp.bfloat16)     # rows (h,w,c)
    p["bfc"] = u(keys[7], (1, FC_DIM), fan)
    fan = FC_DIM
    p["wp"] = u(keys[8], (FC_DIM, n_actions), fan).astype(jnp.bfloat16)
    p["bp"] = u(keys[9], (1, n_actions), fan)
    p["wv"] = u(keys[10], (FC_DIM, 1), fan).astype(jnp.bfloat16)
    p["bv"] = u(keys[11], (1, 1), fan)
    return p


# ----------------------------------------------------------------------------
# Kernel-side packed weights.
# ----------------------------------------------------------------------------
def pack_params(p, n_actions):
    kdim = p["w1"].shape[0]
    # conv1: fold the /256 input scale (exact, power of two) and build the
    # phase-block-diagonal weight: block ph=(ri*2+rj) maps patch columns
    # [ph*kdim, (ph+1)*kdim) (ordered (kh,kw,cin)) to a1 lanes [ph*32, (ph+1)*32).
    w1f = (p["w1"].astype(jnp.float32) * (1.0 / 256.0)).astype(jnp.bfloat16)
    w1p = jnp.zeros((4 * kdim, 4 * C1), jnp.bfloat16)
    for ph in range(4):
        w1p = w1p.at[ph * kdim:(ph + 1) * kdim, ph * C1:(ph + 1) * C1].set(w1f)
    b1p = jnp.tile(p["b1"], (1, 4))                                   # lanes (ri,rj,c)

    # conv2: rows reordered to (quadrant (qi,qj), phase (ri,rj), cin), where the
    # original tap is (kh, kw) = (2*qi+ri, 2*qj+rj).  Matches the packed-a1 gather.
    w2 = p["w2"].reshape(K2, K2, C1, C2)
    w2p = jnp.concatenate(
        [w2[2 * qi + ri, 2 * qj + rj]
         for qi in range(2) for qj in range(2)
         for ri in range(2) for rj in range(2)], axis=0)              # (512, 64)

    # Fused, lane-dense head: [policy | value | zero padding] -> 128-wide columns.
    head_pad = ((n_actions + 1 + 127) // 128) * 128
    wh = jnp.zeros((FC_DIM, head_pad), jnp.bfloat16)
    wh = wh.at[:, :n_actions].set(p["wp"]).at[:, n_actions:n_actions + 1].set(p["wv"])
    bh = jnp.zeros((1, head_pad), jnp.float32)
    bh = bh.at[:, :n_actions].set(p["bp"]).at[:, n_actions:n_actions + 1].set(p["bv"])

    return {"w1p": w1p, "b1p": b1p, "w2p": w2p, "b2": p["b2"],
            "w3p": p["w3"], "b3": p["b3"], "wfc": p["wfc"], "bfc": p["bfc"],
            "wh": wh, "bh": bh}


# ----------------------------------------------------------------------------
# Fused forward pass (matches ActorCritic.forward semantics).
# ----------------------------------------------------------------------------
@functools.partial(jax.jit, static_argnames=("n_actions",))
def actor_critic_forward(packed, x_nchw, *, n_actions):
    B, Cin, H, W = x_nchw.shape
    oh1, ow1 = _conv_out(H, K1, S1), _conv_out(W, K1, S1)
    oh2, ow2 = _conv_out(oh1, K2, S2), _conv_out(ow1, K2, S2)
    oh3, ow3 = _conv_out(oh2, K3, S3), _conv_out(ow2, K3, S3)
    assert oh1 % 2 == 0 and ow1 % 2 == 0, "conv1 output must be even for phase packing"
    hh, hw = oh1 // 2, ow1 // 2
    kdim = K1 * K1 * Cin
    head_pad = packed["wh"].shape[1]
    assert n_actions + 1 <= head_pad

    # --- Host-side glue (fused under this jit): one tiny uint8 transpose plus strided
    #     slices emitted directly in the kernel's final layout:
    #       rows = (ii, jj, b), cols = (ri, rj, kh, kw, cin),  conv1 out (2*ii+ri, 2*jj+rj).
    #     No post-hoc reshuffle of the patch matrix is needed.
    xt = jnp.transpose(x_nchw, (2, 3, 0, 1))                          # (H, W, B, Cin) u8
    slabs = []
    for ri in range(2):
        for rj in range(2):
            for dh in range(K1):
                for dw in range(K1):
                    i0, j0 = S1 * ri + dh, S1 * rj + dw
                    slabs.append(lax.slice(
                        xt, (i0, j0, 0, 0),
                        (i0 + (hh - 1) * 2 * S1 + 1, j0 + (hw - 1) * 2 * S1 + 1, B, Cin),
                        (2 * S1, 2 * S1, 1, 1)))                      # (hh, hw, B, Cin)
    patches = jnp.stack(slabs, axis=3).reshape(hh * hw * B, 4 * kdim)  # uint8

    def kernel(p_ref, w1_ref, b1_ref, w2_ref, b2_ref, w3_ref, b3_ref,
               wfc_ref, bfc_ref, wh_ref, bh_ref, out_ref):
        f32, bf16 = jnp.float32, jnp.bfloat16

        # conv1: one matmul against the phase-block-diagonal weight writes a1 already
        # packed as rows (ii, jj, b) x 128 dense lanes (ri, rj, c).
        xp = p_ref[...].astype(f32).astype(bf16)                      # exact for u8
        a1 = jnp.dot(xp, w1_ref[...], preferred_element_type=f32)
        a1 = jnp.maximum(a1 + b1_ref[...], 0.0)                       # (hh*hw*B, 128)

        # conv2 (k=4, s=2): each stride-quadrant reads whole 128-lane rows of packed a1;
        # 4 quadrant row-blocks concatenated along K -> ONE (32, 512) matmul.
        quads = []
        for qi in range(2):
            for qj in range(2):
                rows = [a1[((oi + qi) * hw + qj) * B:((oi + qi) * hw + qj) * B + ow2 * B, :]
                        for oi in range(oh2)]
                quads.append(jnp.concatenate(rows, axis=0))           # (oh2*ow2*B, 128)
        x2 = jnp.concatenate(quads, axis=1).astype(bf16)              # (oh2*ow2*B, 512)
        a2 = jnp.dot(x2, w2_ref[...], preferred_element_type=f32)
        a2 = jnp.maximum(a2 + b2_ref[...], 0.0)                       # rows (i, j, b)

        # conv3 (k=3, s=1): 9 taps concatenated along K -> ONE (8, 576) matmul.
        taps = []
        for di in range(K3):
            for dj in range(K3):
                rows = [a2[((pi + di) * ow2 + dj) * B:((pi + di) * ow2 + dj) * B + ow3 * B, :]
                        for pi in range(oh3)]
                taps.append(jnp.concatenate(rows, axis=0))            # (oh3*ow3*B, C2)
        x3 = jnp.concatenate(taps, axis=1).astype(bf16)               # (oh3*ow3*B, 9*C2)
        a3 = jnp.dot(x3, w3_ref[...], preferred_element_type=f32)
        a3 = jnp.maximum(a3 + b3_ref[...], 0.0)                       # rows (h, w, b)

        # fc: regroup rows (h, w, b) -> (b, h*w*c) with one lane concat, ONE matmul.
        fc_in = jnp.concatenate(
            [a3[pos * B:(pos + 1) * B, :] for pos in range(oh3 * ow3)],
            axis=1).astype(bf16)                                      # (B, oh3*ow3*C3)
        fc = jnp.dot(fc_in, wfc_ref[...], preferred_element_type=f32)
        fc = jnp.maximum(fc + bfc_ref[...], 0.0).astype(bf16)         # (B, 512)

        # Fused [policy | value | zero-pad] head: lane-dense (B, 128) store.
        out_ref[...] = (jnp.dot(fc, wh_ref[...], preferred_element_type=f32)
                        + bh_ref[...])

    operands = (patches, packed["w1p"], packed["b1p"], packed["w2p"], packed["b2"],
                packed["w3p"], packed["b3"], packed["wfc"], packed["bfc"],
                packed["wh"], packed["bh"])

    flops = 2 * ((hh * hw * B) * (4 * kdim) * (4 * C1)
                 + (oh2 * ow2 * B) * (16 * C1) * C2
                 + (oh3 * ow3 * B) * (K3 * K3 * C2) * C3
                 + B * (oh3 * ow3 * C3) * FC_DIM
                 + B * FC_DIM * head_pad)
    bytes_accessed = (sum(a.size * a.dtype.itemsize for a in operands)
                      + B * head_pad * 4)

    # NOTE: at grid=(1,) default double-buffering of the (bf16) weights costs <1 MiB of
    # VMEM; acceptable on all generations, so pipeline_mode overrides are skipped.
    head = pl.pallas_call(
        kernel,
        out_shape=jax.ShapeDtypeStruct((B, head_pad), jnp.float32),
        grid=(1,),
        in_specs=[pl.BlockSpec(a.shape, lambda i: (0, 0)) for a in operands],
        out_specs=pl.BlockSpec((B, head_pad), lambda i: (0, 0)),
        compiler_params=pltpu.CompilerParams(dimension_semantics=("arbitrary",)),
        cost_estimate=pl.CostEstimate(flops=flops, transcendentals=0,
                                      bytes_accessed=bytes_accessed),
    )(*operands)

    return head[:, :n_actions], head[:, n_actions:n_actions + 1]


# ----------------------------------------------------------------------------
# Pure-JAX reference with the SAME dtype schedule (bf16 weights/activations, f32
# accumulation) so the check isolates the kernel's packing / gather logic.
# ----------------------------------------------------------------------------
def reference_forward(p, x_nchw, n_actions):
    f32, bf16 = jnp.float32, jnp.bfloat16
    B, Cin = x_nchw.shape[0], x_nchw.shape[1]
    h = (x_nchw.astype(f32) / 256.0).astype(bf16)         # exact: u8 / 2^8
    h = jnp.transpose(h, (0, 2, 3, 1))                    # NHWC

    def conv(h, w_flat, b, k, s, cin, cout):
        w = w_flat.reshape(k, k, cin, cout)               # HWIO (rows were (kh,kw,cin))
        y = lax.conv_general_dilated(h, w, (s, s), "VALID",
                                     dimension_numbers=("NHWC", "HWIO", "NHWC"),
                                     preferred_element_type=f32)
        return jnp.maximum(y + b.reshape(1, 1, 1, cout), 0.0).astype(bf16)

    h = conv(h, p["w1"], p["b1"], K1, S1, Cin, C1)
    h = conv(h, p["w2"], p["b2"], K2, S2, C1, C2)
    h = conv(h, p["w3"], p["b3"], K3, S3, C2, C3)
    flat = h.reshape(B, -1)                               # NHWC flatten = (h, w, c)
    fc = jnp.maximum(jnp.dot(flat, p["wfc"], preferred_element_type=f32)
                     + p["bfc"], 0.0).astype(bf16)
    policy = jnp.dot(fc, p["wp"], preferred_element_type=f32) + p["bp"]
    value = jnp.dot(fc, p["wv"], preferred_element_type=f32) + p["bv"]
    return policy, value


if __name__ == "__main__":
    B, C, S = 2, 4, 44          # 44x44 frames -> conv stack yields 2x2x64 = 256 feats
    N_ACTIONS = 6

    key = jax.random.PRNGKey(0)
    kx, kp = jax.random.split(key)
    # uint8-style observations (as implied by x.float()/256 in the module)
    x = jax.random.randint(kx, (B, C, S, S), 0, 256, dtype=jnp.int32).astype(jnp.uint8)
    params = init_params(kp, C, S, N_ACTIONS)
    packed = pack_params(params, N_ACTIONS)

    policy, value = actor_critic_forward(packed, x, n_actions=N_ACTIONS)
    jax.block_until_ready((policy, value))

    assert policy.shape == (B, N_ACTIONS), policy.shape
    assert value.shape == (B, 1), value.shape
    assert policy.dtype == jnp.float32 and value.dtype == jnp.float32

    ref_policy, ref_value = reference_forward(params, x, N_ACTIONS)
    assert jnp.allclose(policy, ref_policy, atol=5e-3, rtol=5e-3), (
        float(jnp.max(jnp.abs(policy - ref_policy))))
    assert jnp.allclose(value, ref_value, atol=5e-3, rtol=5e-3), (
        float(jnp.max(jnp.abs(value - ref_value))))

    print("KERNEL_OK")
</pallas_src>

<mosaic_0001>
module attributes {stable_mosaic.version = 11 : i64} {
  func.func @kernel(%arg0: i32, %arg1: memref<50x1024xi8, #tpu.memory_space<vmem>>, %arg2: memref<1024x128xbf16, #tpu.memory_space<vmem>>, %arg3: memref<1x128xf32, #tpu.memory_space<vmem>>, %arg4: memref<512x64xbf16, #tpu.memory_space<vmem>>, %arg5: memref<1x64xf32, #tpu.memory_space<vmem>>, %arg6: memref<576x64xbf16, #tpu.memory_space<vmem>>, %arg7: memref<1x64xf32, #tpu.memory_space<vmem>>, %arg8: memref<256x512xbf16, #tpu.memory_space<vmem>>, %arg9: memref<1x512xf32, #tpu.memory_space<vmem>>, %arg10: memref<512x128xbf16, #tpu.memory_space<vmem>>, %arg11: memref<1x128xf32, #tpu.memory_space<vmem>>, %arg12: memref<2x128xf32, #tpu.memory_space<vmem>>) attributes {dimension_semantics = [#tpu.dimension_semantics<arbitrary>], iteration_bounds = array<i64: 1>, scalar_prefetch = 0 : i64, scratch_operands = 0 : i64, tpu.core_type = #tpu.core_type<tc>, window_params = [{pipeline_mode = #tpu.pipeline_mode<synchronous>, transform_indices = @transform_0, window_bounds = array<i64: 50, 1024>}, {pipeline_mode = #tpu.pipeline_mode<synchronous>, transform_indices = @transform_1, window_bounds = array<i64: 1024, 128>}, {pipeline_mode = #tpu.pipeline_mode<synchronous>, transform_indices = @transform_2, window_bounds = array<i64: 1, 128>}, {pipeline_mode = #tpu.pipeline_mode<synchronous>, transform_indices = @transform_3, window_bounds = array<i64: 512, 64>}, {pipeline_mode = #tpu.pipeline_mode<synchronous>, transform_indices = @transform_4, window_bounds = array<i64: 1, 64>}, {pipeline_mode = #tpu.pipeline_mode<synchronous>, transform_indices = @transform_5, window_bounds = array<i64: 576, 64>}, {pipeline_mode = #tpu.pipeline_mode<synchronous>, transform_indices = @transform_6, window_bounds = array<i64: 1, 64>}, {pipeline_mode = #tpu.pipeline_mode<synchronous>, transform_indices = @transform_7, window_bounds = array<i64: 256, 512>}, {pipeline_mode = #tpu.pipeline_mode<synchronous>, transform_indices = @transform_8, window_bounds = array<i64: 1, 512>}, {pipeline_mode = #tpu.pipeline_mode<synchronous>, transform_indices = @transform_9, window_bounds = array<i64: 512, 128>}, {pipeline_mode = #tpu.pipeline_mode<synchronous>, transform_indices = @transform_10, window_bounds = array<i64: 1, 128>}, {pipeline_mode = #tpu.pipeline_mode<synchronous>, transform_indices = @transform_11, window_bounds = array<i64: 2, 128>}]} {
    %c0 = arith.constant 0 : index
    %c0_0 = arith.constant 0 : index
    %0 = vector.load %arg1[%c0, %c0_0] : memref<50x1024xi8, #tpu.memory_space<vmem>>, vector<50x1024xi8>
    %1 = arith.uitofp %0 : vector<50x1024xi8> to vector<50x1024xf32>
    %2 = arith.truncf %1 : vector<50x1024xf32> to vector<50x1024xbf16>
    %c0_1 = arith.constant 0 : index
    %c0_2 = arith.constant 0 : index
    %3 = vector.load %arg2[%c0_1, %c0_2] : memref<1024x128xbf16, #tpu.memory_space<vmem>>, vector<1024x128xbf16>
    %cst = arith.constant dense<0.000000e+00> : vector<50x128xf32>
    %4 = tpu.matmul %2, %3, %cst {dimension_numbers = #tpu.dot_dimension_numbers<[1], [0], [0], [1], [0, 0, 1, 1], [], []>} : vector<50x1024xbf16>, vector<1024x128xbf16>, vector<50x128xf32> -> vector<50x128xf32>
    %c0_3 = arith.constant 0 : index
    %c0_4 = arith.constant 0 : index
    %5 = vector.load %arg3[%c0_3, %c0_4] : memref<1x128xf32, #tpu.memory_space<vmem>>, vector<1x128xf32>
    %6 = vector.broadcast %5 : vector<1x128xf32> to vector<50x128xf32>
    %7 = arith.addf %4, %6 : vector<50x128xf32>
    %cst_5 = arith.constant 0.000000e+00 : f32
    %8 = vector.broadcast %cst_5 : f32 to vector<50x128xf32>
    %9 = arith.maximumf %7, %8 : vector<50x128xf32>
    %10 = vector.extract_strided_slice %9 {offsets = [0, 0], sizes = [8, 128], strides = [1, 1]} : vector<50x128xf32> to vector<8x128xf32>
    %11 = vector.extract_strided_slice %9 {offsets = [10, 0], sizes = [8, 128], strides = [1, 1]} : vector<50x128xf32> to vector<8x128xf32>
    %12 = vector.extract_strided_slice %9 {offsets = [20, 0], sizes = [8, 128], strides = [1, 1]} : vector<50x128xf32> to vector<8x128xf32>
    %13 = vector.extract_strided_slice %9 {offsets = [30, 0], sizes = [8, 128], strides = [1, 1]} : vector<50x128xf32> to vector<8x128xf32>
    %14 = tpu.concatenate %10, %11, %12, %13 in 0 : vector<8x128xf32>, vector<8x128xf32>, vector<8x128xf32>, vector<8x128xf32> -> vector<32x128xf32>
    %15 = vector.extract_strided_slice %9 {offsets = [2, 0], sizes = [8, 128], strides = [1, 1]} : vector<50x128xf32> to vector<8x128xf32>
    %16 = vector.extract_strided_slice %9 {offsets = [12, 0], sizes = [8, 128], strides = [1, 1]} : vector<50x128xf32> to vector<8x128xf32>
    %17 = vector.extract_strided_slice %9 {offsets = [22, 0], sizes = [8, 128], strides = [1, 1]} : vector<50x128xf32> to vector<8x128xf32>
    %18 = vector.extract_strided_slice %9 {offsets = [32, 0], sizes = [8, 128], strides = [1, 1]} : vector<50x128xf32> to vector<8x128xf32>
    %19 = tpu.concatenate %15, %16, %17, %18 in 0 : vector<8x128xf32>, vector<8x128xf32>, vector<8x128xf32>, vector<8x128xf32> -> vector<32x128xf32>
    %20 = vector.extract_strided_slice %9 {offsets = [10, 0], sizes = [8, 128], strides = [1, 1]} : vector<50x128xf32> to vector<8x128xf32>
    %21 = vector.extract_strided_slice %9 {offsets = [20, 0], sizes = [8, 128], strides = [1, 1]} : vector<50x128xf32> to vector<8x128xf32>
    %22 = vector.extract_strided_slice %9 {offsets = [30, 0], sizes = [8, 128], strides = [1, 1]} : vector<50x128xf32> to vector<8x128xf32>
    %23 = vector.extract_strided_slice %9 {offsets = [40, 0], sizes = [8, 128], strides = [1, 1]} : vector<50x128xf32> to vector<8x128xf32>
    %24 = tpu.concatenate %20, %21, %22, %23 in 0 : vector<8x128xf32>, vector<8x128xf32>, vector<8x128xf32>, vector<8x128xf32> -> vector<32x128xf32>
    %25 = vector.extract_strided_slice %9 {offsets = [12, 0], sizes = [8, 128], strides = [1, 1]} : vector<50x128xf32> to vector<8x128xf32>
    %26 = vector.extract_strided_slice %9 {offsets = [22, 0], sizes = [8, 128], strides = [1, 1]} : vector<50x128xf32> to vector<8x128xf32>
    %27 = vector.extract_strided_slice %9 {offsets = [32, 0], sizes = [8, 128], strides = [1, 1]} : vector<50x128xf32> to vector<8x128xf32>
    %28 = vector.extract_strided_slice %9 {offsets = [42, 0], sizes = [8, 128], strides = [1, 1]} : vector<50x128xf32> to vector<8x128xf32>
    %29 = tpu.concatenate %25, %26, %27, %28 in 0 : vector<8x128xf32>, vector<8x128xf32>, vector<8x128xf32>, vector<8x128xf32> -> vector<32x128xf32>
    %30 = tpu.concatenate %14, %19, %24, %29 in 1 : vector<32x128xf32>, vector<32x128xf32>, vector<32x128xf32>, vector<32x128xf32> -> vector<32x512xf32>
    %31 = arith.truncf %30 : vector<32x512xf32> to vector<32x512xbf16>
    %c0_6 = arith.constant 0 : index
    %c0_7 = arith.constant 0 : index
    %32 = vector.load %arg4[%c0_6, %c0_7] : memref<512x64xbf16, #tpu.memory_space<vmem>>, vector<512x64xbf16>
    %cst_8 = arith.constant dense<0.000000e+00> : vector<32x64xf32>
    %33 = tpu.matmul %31, %32, %cst_8 {dimension_numbers = #tpu.dot_dimension_numbers<[1], [0], [0], [1], [0, 0, 1, 1], [], []>} : vector<32x512xbf16>, vector<512x64xbf16>, vector<32x64xf32> -> vector<32x64xf32>
    %c0_9 = arith.constant 0 : index
    %c0_10 = arith.constant 0 : index
    %34 = vector.load %arg5[%c0_9, %c0_10] : memref<1x64xf32, #tpu.memory_space<vmem>>, vector<1x64xf32>
    %35 = vector.broadcast %34 : vector<1x64xf32> to vector<32x64xf32>
    %36 = arith.addf %33, %35 : vector<32x64xf32>
    %cst_11 = arith.constant 0.000000e+00 : f32
    %37 = vector.broadcast %cst_11 : f32 to vector<32x64xf32>
    %38 = arith.maximumf %36, %37 : vector<32x64xf32>
    %39 = vector.extract_strided_slice %38 {offsets = [0, 0], sizes = [4, 64], strides = [1, 1]} : vector<32x64xf32> to vector<4x64xf32>
    %40 = vector.extract_strided_slice %38 {offsets = [8, 0], sizes = [4, 64], strides = [1, 1]} : vector<32x64xf32> to vector<4x64xf32>
    %41 = tpu.concatenate %39, %40 in 0 : vector<4x64xf32>, vector<4x64xf32> -> vector<8x64xf32>
    %42 = vector.extract_strided_slice %38 {offsets = [2, 0], sizes = [4, 64], strides = [1, 1]} : vector<32x64xf32> to vector<4x64xf32>
    %43 = vector.extract_strided_slice %38 {offsets = [10, 0], sizes = [4, 64], strides = [1, 1]} : vector<32x64xf32> to vector<4x64xf32>
    %44 = tpu.concatenate %42, %43 in 0 : vector<4x64xf32>, vector<4x64xf32> -> vector<8x64xf32>
    %45 = vector.extract_strided_slice %38 {offsets = [4, 0], sizes = [4, 64], strides = [1, 1]} : vector<32x64xf32> to vector<4x64xf32>
    %46 = vector.extract_strided_slice %38 {offsets = [12, 0], sizes = [4, 64], strides = [1, 1]} : vector<32x64xf32> to vector<4x64xf32>
    %47 = tpu.concatenate %45, %46 in 0 : vector<4x64xf32>, vector<4x64xf32> -> vector<8x64xf32>
    %48 = vector.extract_strided_slice %38 {offsets = [8, 0], sizes = [4, 64], strides = [1, 1]} : vector<32x64xf32> to vector<4x64xf32>
    %49 = vector.extract_strided_slice %38 {offsets = [16, 0], sizes = [4, 64], strides = [1, 1]} : vector<32x64xf32> to vector<4x64xf32>
    %50 = tpu.concatenate %48, %49 in 0 : vector<4x64xf32>, vector<4x64xf32> -> vector<8x64xf32>
    %51 = vector.extract_strided_slice %38 {offsets = [10, 0], sizes = [4, 64], strides = [1, 1]} : vector<32x64xf32> to vector<4x64xf32>
    %52 = vector.extract_strided_slice %38 {offsets = [18, 0], sizes = [4, 64], strides = [1, 1]} : vector<32x64xf32> to vector<4x64xf32>
    %53 = tpu.concatenate %51, %52 in 0 : vector<4x64xf32>, vector<4x64xf32> -> vector<8x64xf32>
    %54 = vector.extract_strided_slice %38 {offsets = [12, 0], sizes = [4, 64], strides = [1, 1]} : vector<32x64xf32> to vector<4x64xf32>
    %55 = vector.extract_strided_slice %38 {offsets = [20, 0], sizes = [4, 64], strides = [1, 1]} : vector<32x64xf32> to vector<4x64xf32>
    %56 = tpu.concatenate %54, %55 in 0 : vector<4x64xf32>, vector<4x64xf32> -> vector<8x64xf32>
    %57 = vector.extract_strided_slice %38 {offsets = [16, 0], sizes = [4, 64], strides = [1, 1]} : vector<32x64xf32> to vector<4x64xf32>
    %58 = vector.extract_strided_slice %38 {offsets = [24, 0], sizes = [4, 64], strides = [1, 1]} : vector<32x64xf32> to vector<4x64xf32>
    %59 = tpu.concatenate %57, %58 in 0 : vector<4x64xf32>, vector<4x64xf32> -> vector<8x64xf32>
    %60 = vector.extract_strided_slice %38 {offsets = [18, 0], sizes = [4, 64], strides = [1, 1]} : vector<32x64xf32> to vector<4x64xf32>
    %61 = vector.extract_strided_slice %38 {offsets = [26, 0], sizes = [4, 64], strides = [1, 1]} : vector<32x64xf32> to vector<4x64xf32>
    %62 = tpu.concatenate %60, %61 in 0 : vector<4x64xf32>, vector<4x64xf32> -> vector<8x64xf32>
    %63 = vector.extract_strided_slice %38 {offsets = [20, 0], sizes = [4, 64], strides = [1, 1]} : vector<32x64xf32> to vector<4x64xf32>
    %64 = vector.extract_strided_slice %38 {offsets = [28, 0], sizes = [4, 64], strides = [1, 1]} : vector<32x64xf32> to vector<4x64xf32>
    %65 = tpu.concatenate %63, %64 in 0 : vector<4x64xf32>, vector<4x64xf32> -> vector<8x64xf32>
    %66 = tpu.concatenate %41, %44, %47, %50, %53, %56, %59, %62, %65 in 1 : vector<8x64xf32>, vector<8x64xf32>, vector<8x64xf32>, vector<8x64xf32>, vector<8x64xf32>, vector<8x64xf32>, vector<8x64xf32>, vector<8x64xf32>, vector<8x64xf32> -> vector<8x576xf32>
    %67 = arith.truncf %66 : vector<8x576xf32> to vector<8x576xbf16>
    %c0_12 = arith.constant 0 : index
    %c0_13 = arith.constant 0 : index
    %68 = vector.load %arg6[%c0_12, %c0_13] : memref<576x64xbf16, #tpu.memory_space<vmem>>, vector<576x64xbf16>
    %cst_14 = arith.constant dense<0.000000e+00> : vector<8x64xf32>
    %69 = tpu.matmul %67, %68, %cst_14 {dimension_numbers = #tpu.dot_dimension_numbers<[1], [0], [0], [1], [0, 0, 1, 1], [], []>} : vector<8x576xbf16>, vector<576x64xbf16>, vector<8x64xf32> -> vector<8x64xf32>
    %c0_15 = arith.constant 0 : index
    %c0_16 = arith.constant 0 : index
    %70 = vector.load %arg7[%c0_15, %c0_16] : memref<1x64xf32, #tpu.memory_space<vmem>>, vector<1x64xf32>
    %71 = vector.broadcast %70 : vector<1x64xf32> to vector<8x64xf32>
    %72 = arith.addf %69, %71 : vector<8x64xf32>
    %cst_17 = arith.constant 0.000000e+00 : f32
    %73 = vector.broadcast %cst_17 : f32 to vector<8x64xf32>
    %74 = arith.maximumf %72, %73 : vector<8x64xf32>
    %75 = vector.extract_strided_slice %74 {offsets = [0, 0], sizes = [2, 64], strides = [1, 1]} : vector<8x64xf32> to vector<2x64xf32>
    %76 = vector.extract_strided_slice %74 {offsets = [2, 0], sizes = [2, 64], strides = [1, 1]} : vector<8x64xf32> to vector<2x64xf32>
    %77 = vector.extract_strided_slice %74 {offsets = [4, 0], sizes = [2, 64], strides = [1, 1]} : vector<8x64xf32> to vector<2x64xf32>
    %78 = vector.extract_strided_slice %74 {offsets = [6, 0], sizes = [2, 64], strides = [1, 1]} : vector<8x64xf32> to vector<2x64xf32>
    %79 = tpu.concatenate %75, %76, %77, %78 in 1 : vector<2x64xf32>, vector<2x64xf32>, vector<2x64xf32>, vector<2x64xf32> -> vector<2x256xf32>
    %80 = arith.truncf %79 : vector<2x256xf32> to vector<2x256xbf16>
    %c0_18 = arith.constant 0 : index
    %c0_19 = arith.constant 0 : index
    %81 = vector.load %arg8[%c0_18, %c0_19] : memref<256x512xbf16, #tpu.memory_space<vmem>>, vector<256x512xbf16>
    %cst_20 = arith.constant dense<0.000000e+00> : vector<2x512xf32>
    %82 = tpu.matmul %80, %81, %cst_20 {dimension_numbers = #tpu.dot_dimension_numbers<[1], [0], [0], [1], [0, 0, 1, 1], [], []>} : vector<2x256xbf16>, vector<256x512xbf16>, vector<2x512xf32> -> vector<2x512xf32>
    %c0_21 = arith.constant 0 : index
    %c0_22 = arith.constant 0 : index
    %83 = vector.load %arg9[%c0_21, %c0_22] : memref<1x512xf32, #tpu.memory_space<vmem>>, vector<1x512xf32>
    %84 = vector.broadcast %83 : vector<1x512xf32> to vector<2x512xf32>
    %85 = arith.addf %82, %84 : vector<2x512xf32>
    %cst_23 = arith.constant 0.000000e+00 : f32
    %86 = vector.broadcast %cst_23 : f32 to vector<2x512xf32>
    %87 = arith.maximumf %85, %86 : vector<2x512xf32>
    %88 = arith.truncf %87 : vector<2x512xf32> to vector<2x512xbf16>
    %c0_24 = arith.constant 0 : index
    %c0_25 = arith.constant 0 : index
    %89 = vector.load %arg10[%c0_24, %c0_25] : memref<512x128xbf16, #tpu.memory_space<vmem>>, vector<512x128xbf16>
    %cst_26 = arith.constant dense<0.000000e+00> : vector<2x128xf32>
    %90 = tpu.matmul %88, %89, %cst_26 {dimension_numbers = #tpu.dot_dimension_numbers<[1], [0], [0], [1], [0, 0, 1, 1], [], []>} : vector<2x512xbf16>, vector<512x128xbf16>, vector<2x128xf32> -> vector<2x128xf32>
    %c0_27 = arith.constant 0 : index
    %c0_28 = arith.constant 0 : index
    %91 = vector.load %arg11[%c0_27, %c0_28] : memref<1x128xf32, #tpu.memory_space<vmem>>, vector<1x128xf32>
    %92 = vector.broadcast %91 : vector<1x128xf32> to vector<2x128xf32>
    %93 = arith.addf %90, %92 : vector<2x128xf32>
    %c0_29 = arith.constant 0 : index
    %c0_30 = arith.constant 0 : index
    %94 = vector.load %arg12[%c0_29, %c0_30] : memref<2x128xf32, #tpu.memory_space<vmem>>, vector<2x128xf32>
    tpu.vector_store %arg12[%c0_29, %c0_30], %93 {strides = array<i32>} : memref<2x128xf32, #tpu.memory_space<vmem>>, vector<2x128xf32>,
    return
  }
  func.func @transform_0(%arg0: i32) -> (i32, i32) {
    %c0_i32 = arith.constant 0 : i32
    %c0_i32_0 = arith.constant 0 : i32
    %c0_i32_1 = arith.constant 0 : i32
    return %c0_i32, %c0_i32_0 : i32, i32
  }
  func.func @transform_1(%arg0: i32) -> (i32, i32) {
    %c0_i32 = arith.constant 0 : i32
    %c0_i32_0 = arith.constant 0 : i32
    %c0_i32_1 = arith.constant 0 : i32
    return %c0_i32, %c0_i32_0 : i32, i32
  }
  func.func @transform_2(%arg0: i32) -> (i32, i32) {
    %c0_i32 = arith.constant 0 : i32
    %c0_i32_0 = arith.constant 0 : i32
    %c0_i32_1 = arith.constant 0 : i32
    return %c0_i32, %c0_i32_0 : i32, i32
  }
  func.func @transform_3(%arg0: i32) -> (i32, i32) {
    %c0_i32 = arith.constant 0 : i32
    %c0_i32_0 = arith.constant 0 : i32
    %c0_i32_1 = arith.constant 0 : i32
    return %c0_i32, %c0_i32_0 : i32, i32
  }
  func.func @transform_4(%arg0: i32) -> (i32, i32) {
    %c0_i32 = arith.constant 0 : i32
    %c0_i32_0 = arith.constant 0 : i32
    %c0_i32_1 = arith.constant 0 : i32
    return %c0_i32, %c0_i32_0 : i32, i32
  }
  func.func @transform_5(%arg0: i32) -> (i32, i32) {
    %c0_i32 = arith.constant 0 : i32
    %c0_i32_0 = arith.constant 0 : i32
    %c0_i32_1 = arith.constant 0 : i32
    return %c0_i32, %c0_i32_0 : i32, i32
  }
  func.func @transform_6(%arg0: i32) -> (i32, i32) {
    %c0_i32 = arith.constant 0 : i32
    %c0_i32_0 = arith.constant 0 : i32
    %c0_i32_1 = arith.constant 0 : i32
    return %c0_i32, %c0_i32_0 : i32, i32
  }
  func.func @transform_7(%arg0: i32) -> (i32, i32) {
    %c0_i32 = arith.constant 0 : i32
    %c0_i32_0 = arith.constant 0 : i32
    %c0_i32_1 = arith.constant 0 : i32
    return %c0_i32, %c0_i32_0 : i32, i32
  }
  func.func @transform_8(%arg0: i32) -> (i32, i32) {
    %c0_i32 = arith.constant 0 : i32
    %c0_i32_0 = arith.constant 0 : i32
    %c0_i32_1 = arith.constant 0 : i32
    return %c0_i32, %c0_i32_0 : i32, i32
  }
  func.func @transform_9(%arg0: i32) -> (i32, i32) {
    %c0_i32 = arith.constant 0 : i32
    %c0_i32_0 = arith.constant 0 : i32
    %c0_i32_1 = arith.constant 0 : i32
    return %c0_i32, %c0_i32_0 : i32, i32
  }
  func.func @transform_10(%arg0: i32) -> (i32, i32) {
    %c0_i32 = arith.constant 0 : i32
    %c0_i32_0 = arith.constant 0 : i32
    %c0_i32_1 = arith.constant 0 : i32
    return %c0_i32, %c0_i32_0 : i32, i32
  }
  func.func @transform_11(%arg0: i32) -> (i32, i32) {
    %c0_i32 = arith.constant 0 : i32
    %c0_i32_0 = arith.constant 0 : i32
    %c0_i32_1 = arith.constant 0 : i32
    return %c0_i32, %c0_i32_0 : i32, i32
  }
}

</mosaic_0001>

<bundles_post_ra>
// kernel: actor_critic_forward.1
= control target key start
LH: loop header
LB: loop body
LE: loop exit
PB: predicated region body
PF: predicated region fallthrough
CT: control target
= control target key end

     0   :  { %vm1002_vm0 = vcmask 1045504   ;;  %vm1008_vm1 = vcmask 1043456   ;;  %vm1014_vm2 = vcmask 1041408   ;;  %s3792_s14 = smov 64   ;;  %vm1432_vm3 = vcmask 523264   ;;  %s4932_s1 = inlined_call_operand.vmem [shape: bf16[1024,128], index: 1, kind: input, shape index: {}]   ;;  %s4933_s0 = inlined_call_operand.vmem [shape: u8[50,1024], index: 0, kind: input, shape index: {}]   ;;  %s4934_s2 = inlined_call_operand.vmem [shape: f32[1,128], index: 2, kind: input, shape index: {}]   ;;  %s4935_s4 = inlined_call_operand.vmem [shape: f32[1,64], index: 4, kind: input, shape index: {}]   ;;  %s4936_s3 = inlined_call_operand.vmem [shape: bf16[512,64], index: 3, kind: input, shape index: {}]   ;;  %s4937_s5 = inlined_call_operand.vmem [shape: bf16[576,64], index: 5, kind: input, shape index: {}]   ;;  %s4938_s6 = inlined_call_operand.vmem [shape: f32[1,64], index: 6, kind: input, shape index: {}]   ;;  %s4939_s7 = inlined_call_operand.vmem [shape: bf16[256,512], index: 7, kind: input, shape index: {}]   ;;  %s4940_s10 = inlined_call_operand.vmem [shape: f32[1,128], index: 10, kind: input, shape index: {}]   ;;  %s4941_s9 = inlined_call_operand.vmem [shape: bf16[512,128], index: 9, kind: input, shape index: {}]   ;;  %s4942_s8 = inlined_call_operand.vmem [shape: f32[1,512], index: 8, kind: input, shape index: {}]   ;;  %s4943_s11 = inlined_call_operand.vmem [shape: f32[2,128], index: 11, kind: output, shape index: {}]  }
   0x1   :  { %v3561_v0 = vld [vmem:[%s4932_s1 + $0x38] sm:$0xff]  ;;  %v3560_v4 = vld [vmem:[%s4932_s1 + $0x30] sm:$0xff]  ;;  %v3559_v8 = vld [vmem:[%s4932_s1 + $0x28] sm:$0xff] }
   0x2   :  { %v3569_v1 = vld [vmem:[%s4932_s1 + $0x78] sm:$0xff]  ;;  %769 = vmatpush.bf16.msra.mxu0 %v3561_v0  ;;  %v3568_v5 = vld [vmem:[%s4932_s1 + $0x70] sm:$0xff]  ;;  %v3567_v9 = vld [vmem:[%s4932_s1 + $0x68] sm:$0xff] }
   0x3   :  { %v3577_v2 = vld [vmem:[%s4932_s1 + $0xb8] sm:$0xff]  ;;  %797 = vmatpush.bf16.msra.mxu1 %v3569_v1  ;;  %v3576_v6 = vld [vmem:[%s4932_s1 + $0xb0] sm:$0xff]  ;;  %v3575_v10 = vld [vmem:[%s4932_s1 + $0xa8] sm:$0xff] }
   0x4   :  { %v3585_v3 = vld [vmem:[%s4932_s1 + $0xf8] sm:$0xff]  ;;  %825 = vmatpush.bf16.msra.mxu2 %v3577_v2  ;;  %v3584_v7 = vld [vmem:[%s4932_s1 + $0xf0] sm:$0xff]  ;;  %v3583_v11 = vld [vmem:[%s4932_s1 + $0xe8] sm:$0xff] }
   0x5   :  { %853 = vmatpush.bf16.msra.mxu3 %v3585_v3  ;;  %v3558_v12 = vld [vmem:[%s4932_s1 + $0x20] sm:$0xff]  ;;  %v3557_v16 = vld [vmem:[%s4932_s1 + $0x18] sm:$0xff]  ;;  %v41_v19 = vld [vmem:[%s4933_s0 + $0x10] sm:$0xff] }
   0x6   :  { %770 = vmatpush.bf16.msra.mxu0 %v3560_v4  ;;  %v3566_v13 = vld [vmem:[%s4932_s1 + $0x60] sm:$0xff]  ;;  %v3565_v17 = vld [vmem:[%s4932_s1 + $0x58] sm:$0xff]  ;;  %v61_v23 = vunpack.c.0.s8 %v41_v19  ;;  %v62_v25 = vunpack.c.1.s8 %v41_v19  ;;  %v3556_v26 = vld [vmem:[%s4932_s1 + $0x10] sm:$0xff]  ;;  %v63_v29 = vunpack.c.2.s8 %v41_v19  ;;  %v64_v31 = vunpack.c.3.s8 %v41_v19 }
   0x7   :  { %798 = vmatpush.bf16.msra.mxu1 %v3568_v5  ;;  %v3574_v14 = vld [vmem:[%s4932_s1 + $0xa0] sm:$0xff]  ;;  %v3573_v20 = vld [vmem:[%s4932_s1 + $0x98] sm:$0xff]  ;;  %v3564_v27 = vld [vmem:[%s4932_s1 + $0x50] sm:$0xff] }
   0x8   :  { %826 = vmatpush.bf16.msra.mxu2 %v3576_v6  ;;  %v3582_v15 = vld [vmem:[%s4932_s1 + $0xe0] sm:$0xff]  ;;  %v3581_v21 = vld [vmem:[%s4932_s1 + $0xd8] sm:$0xff]  ;;  %v3572_v32 = vld [vmem:[%s4932_s1 + $0x90] sm:$0xff]  ;;  %v117_v35 = vand.u32 255, %v61_v23  ;;  %v118_v37 = vand.u32 255, %v62_v25  ;;  %v119_v41 = vand.u32 255, %v63_v29 }
   0x9   :  { %854 = vmatpush.bf16.msra.mxu3 %v3584_v7  ;;  %v39_v18 = vld [vmem:[%s4933_s0] sm:$0xff]  ;;  %v3580_v33 = vld [vmem:[%s4932_s1 + $0xd0] sm:$0xff]  ;;  %v3555_v38 = vld [vmem:[%s4932_s1 + $0x8] sm:$0xff]  ;;  %v120_v43 = vand.u32 255, %v64_v31 }
   0xa   :  { %771 = vmatpush.bf16.msra.mxu0 %v3559_v8  ;;  %v53_v22 = vunpack.c.0.s8 %v39_v18  ;;  %v54_v24 = vunpack.c.1.s8 %v39_v18  ;;  %v55_v28 = vunpack.c.2.s8 %v39_v18  ;;  %v56_v30 = vunpack.c.3.s8 %v39_v18  ;;  %v3563_v39 = vld [vmem:[%s4932_s1 + $0x48] sm:$0xff]  ;;  %v3554_v50 = vld [vmem:[%s4932_s1] sm:$0xff]  ;;  %v3609_v58 = vld [vmem:[%s4932_s1 + $0x1b8] sm:$0xff] }
   0xb   :  { %799 = vmatpush.bf16.msra.mxu1 %v3567_v9  ;;  %v3571_v44 = vld [vmem:[%s4932_s1 + $0x88] sm:$0xff]  ;;  %v173_v47 = vcvt.s32.f32 %v117_v35  ;;  %v174_v49 = vcvt.s32.f32 %v118_v37  ;;  %v3562_v51 = vld [vmem:[%s4932_s1 + $0x40] sm:$0xff]  ;;  %v175_v53 = vcvt.s32.f32 %v119_v41  ;;  %v176_v55 = vcvt.s32.f32 %v120_v43  ;;  %v3593_v59 = vld [vmem:[%s4932_s1 + $0x138] sm:$0xff] }
   0xc   :  { %827 = vmatpush.bf16.msra.mxu2 %v3575_v10  ;;  %v109_v34 = vand.u32 255, %v53_v22  ;;  %v110_v36 = vand.u32 255, %v54_v24  ;;  %v111_v40 = vand.u32 255, %v55_v28  ;;  %v112_v42 = vand.u32 255, %v56_v30  ;;  %v3579_v45 = vld [vmem:[%s4932_s1 + $0xc8] sm:$0xff]  ;;  %v3570_v56 = vld [vmem:[%s4932_s1 + $0x80] sm:$0xff] }
   0xd   :  { %855 = vmatpush.bf16.msra.mxu3 %v3583_v11  ;;  %v3578_v57 = vld [vmem:[%s4932_s1 + $0xc0] sm:$0xff]  ;;  %v45_v1 = vld [vmem:[%s4933_s0 + $0x30] sm:$0xff]  ;;  %v3617_v2 = vld [vmem:[%s4932_s1 + $0x1f8] sm:$0xff] }
   0xe   :  { %772 = vmatpush.bf16.msra.mxu0 %v3558_v12  ;;  %v165_v46 = vcvt.s32.f32 %v109_v34  ;;  %v166_v48 = vcvt.s32.f32 %v110_v36  ;;  %v167_v52 = vcvt.s32.f32 %v111_v40  ;;  %v168_v54 = vcvt.s32.f32 %v112_v42  ;;  %v43_v0 = vld [vmem:[%s4933_s0 + $0x20] sm:$0xff]  ;;  %v3601_v3 = vld [vmem:[%s4932_s1 + $0x178] sm:$0xff]  ;;  %v3608_v4 = vld [vmem:[%s4932_s1 + $0x1b0] sm:$0xff] }
   0xf   :  { %800 = vmatpush.bf16.msra.mxu1 %v3566_v13  ;;  %v3592_v5 = vld [vmem:[%s4932_s1 + $0x130] sm:$0xff]  ;;  %v69_v6 = vunpack.c.0.s8 %v43_v0  ;;  %v77_v7 = vunpack.c.0.s8 %v45_v1  ;;  %v70_v8 = vunpack.c.1.s8 %v43_v0  ;;  %v78_v9 = vunpack.c.1.s8 %v45_v1  ;;  %v3606_v28 = vld [vmem:[%s4932_s1 + $0x1a0] sm:$0xff]  ;;  %v3605_v40 = vld [vmem:[%s4932_s1 + $0x198] sm:$0xff] }
  0x10   :  { %828 = vmatpush.bf16.msra.mxu2 %v3574_v14  ;;  %v221_v60 = vpack.c.bf16 %v173_v47, %v165_v46  ;;  %v222_v61 = vpack.c.bf16 %v174_v49, %v166_v48  ;;  %v223_v62 = vpack.c.bf16 %v175_v53, %v167_v52  ;;  %v224_v63 = vpack.c.bf16 %v176_v55, %v168_v54  ;;  %v3616_v14 = vld [vmem:[%s4932_s1 + $0x1f0] sm:$0xff]  ;;  %v3590_v29 = vld [vmem:[%s4932_s1 + $0x120] sm:$0xff]  ;;  %v3589_v41 = vld [vmem:[%s4932_s1 + $0x118] sm:$0xff] }
  0x11   :  { %856 = vmatpush.bf16.msra.mxu3 %v3582_v15  ;;  %v71_v10 = vunpack.c.2.s8 %v43_v0  ;;  %v79_v11 = vunpack.c.2.s8 %v45_v1  ;;  %v72_v12 = vunpack.c.3.s8 %v43_v0  ;;  %v80_v13 = vunpack.c.3.s8 %v45_v1  ;;  %v3600_v15 = vld [vmem:[%s4932_s1 + $0x170] sm:$0xff]  ;;  %v47_v46 = vld [vmem:[%s4933_s0 + $0x40] sm:$0xff]  ;;  %v3613_v48 = vld [vmem:[%s4932_s1 + $0x1d8] sm:$0xff] }
  0x12   :  { %773 = vmatpush.bf16.msra.mxu0 %v3557_v16  ;;  %v3607_v16 = vld [vmem:[%s4932_s1 + $0x1a8] sm:$0xff]  ;;  %v125_v18 = vand.u32 255, %v69_v6  ;;  %v133_v19 = vand.u32 255, %v77_v7  ;;  %v49_v47 = vld [vmem:[%s4933_s0 + $0x50] sm:$0xff]  ;;  %v3597_v49 = vld [vmem:[%s4932_s1 + $0x158] sm:$0xff]  ;;  %v85_v52 = vunpack.c.0.s8 %v47_v46  ;;  %v86_v54 = vunpack.c.1.s8 %v47_v46 }
  0x13   :  { %801 = vmatpush.bf16.msra.mxu1 %v3565_v17  ;;  %v3591_v17 = vld [vmem:[%s4932_s1 + $0x128] sm:$0xff]  ;;  %v127_v22 = vand.u32 255, %v71_v10  ;;  %v135_v23 = vand.u32 255, %v79_v11  ;;  %v128_v24 = vand.u32 255, %v72_v12  ;;  %v136_v25 = vand.u32 255, %v80_v13  ;;  %v3602_v10 = vld [vmem:[%s4932_s1 + $0x180] sm:$0xff] }
  0x14   :  { %829 = vmatpush.bf16.msra.mxu2 %v3573_v20  ;;  %v126_v20 = vand.u32 255, %v70_v8  ;;  %v181_v30 = vcvt.s32.f32 %v125_v18  ;;  %v189_v31 = vcvt.s32.f32 %v133_v19  ;;  %v93_v53 = vunpack.c.0.s8 %v49_v47  ;;  %v3611_v8 = vld [vmem:[%s4932_s1 + $0x1c8] sm:$0xff]  ;;  %v3586_v11 = vld [vmem:[%s4932_s1 + $0x100] sm:$0xff] }
  0x15   :  { %857 = vmatpush.bf16.msra.mxu3 %v3581_v21  ;;  %v134_v21 = vand.u32 255, %v78_v9  ;;  %v183_v34 = vcvt.s32.f32 %v127_v22  ;;  %v191_v35 = vcvt.s32.f32 %v135_v23  ;;  %v184_v36 = vcvt.s32.f32 %v128_v24  ;;  %v3595_v9 = vld [vmem:[%s4932_s1 + $0x148] sm:$0xff] }
  0x16   :  { %774 = vmatpush.bf16.msra.mxu0 %v3556_v26  ;;  %v3615_v26 = vld [vmem:[%s4932_s1 + $0x1e8] sm:$0xff]  ;;  %v192_v37 = vcvt.s32.f32 %v136_v25  ;;  %v229_v42 = vpack.c.bf16 %v189_v31, %v181_v30  ;;  %v94_v55 = vunpack.c.1.s8 %v49_v47  ;;  %v141_v0 = vand.u32 255, %v85_v52 }
  0x17   :  { %802 = vmatpush.bf16.msra.mxu1 %v3564_v27  ;;  %v3599_v27 = vld [vmem:[%s4932_s1 + $0x168] sm:$0xff]  ;;  %v149_v1 = vand.u32 255, %v93_v53 }
  0x18   :  { %830 = vmatpush.bf16.msra.mxu2 %v3572_v32  ;;  %v182_v32 = vcvt.s32.f32 %v126_v20  ;;  %v197_v12 = vcvt.s32.f32 %v141_v0  ;;  %v3610_v20 = vld [vmem:[%s4932_s1 + $0x1c0] sm:$0xff] }
  0x19   :  { %858 = vmatpush.bf16.msra.mxu3 %v3580_v33  ;;  %v190_v33 = vcvt.s32.f32 %v134_v21  ;;  %v205_v13 = vcvt.s32.f32 %v149_v1  ;;  %v3594_v21 = vld [vmem:[%s4932_s1 + $0x140] sm:$0xff] }
  0x1a   :  { %775 = vmatpush.bf16.msra.mxu0 %v3555_v38  ;;  %v3614_v38 = vld [vmem:[%s4932_s1 + $0x1e0] sm:$0xff] }
  0x1b   :  { %803 = vmatpush.bf16.msra.mxu1 %v3563_v39  ;;  %v3598_v39 = vld [vmem:[%s4932_s1 + $0x160] sm:$0xff]  ;;  %v230_v43 = vpack.c.bf16 %v190_v33, %v182_v32  ;;  %v237_v22 = vpack.c.bf16 %v205_v13, %v197_v12 }
  0x1c   :  { %831 = vmatpush.bf16.msra.mxu2 %v3571_v44  ;;  %v231_v44 = vpack.c.bf16 %v191_v35, %v183_v34 }
  0x1d   :  { %859 = vmatpush.bf16.msra.mxu3 %v3579_v45  ;;  %v232_v45 = vpack.c.bf16 %v192_v37, %v184_v36 }
  0x1e   :  { %776 = vmatpush.bf16.msra.mxu0 %v3554_v50  ;;  %v3604_v50 = vld [vmem:[%s4932_s1 + $0x190] sm:$0xff] }
  0x1f   :  { %804 = vmatpush.bf16.msra.mxu1 %v3562_v51  ;;  %v3588_v51 = vld [vmem:[%s4932_s1 + $0x110] sm:$0xff] }
  0x20   :  { %832 = vmatpush.bf16.msra.mxu2 %v3570_v56  ;;  %v87_v56 = vunpack.c.2.s8 %v47_v46 }
  0x21   :  { %860 = vmatpush.bf16.msra.mxu3 %v3578_v57  ;;  %777 = vmatmul.bf16.vlgmr.msra.gmra.mxu0 %v221_v60  ;;  %v95_v57 = vunpack.c.2.s8 %v49_v47  ;;  %v3612_v60 = vld [vmem:[%s4932_s1 + $0x1d0] sm:$0xff] }
  0x22   :  { %881 = vmatpush.bf16.msrb.mxu0 %v3593_v59  ;;  %805 = vmatmul.bf16.vlgmr.msra.gmra.mxu1 %v222_v61  ;;  %v96_v59 = vunpack.c.3.s8 %v49_v47  ;;  %v3596_v61 = vld [vmem:[%s4932_s1 + $0x150] sm:$0xff] }
  0x23   :  { %833 = vmatmul.bf16.vlgmr.msra.gmra.mxu2 %v223_v62  ;;  %909 = vmatpush.bf16.msrb.mxu1 %v3601_v3  ;;  %v3603_v62 = vld [vmem:[%s4932_s1 + $0x188] sm:$0xff]  ;;  %v150_v3 = vand.u32 255, %v94_v55 }
  0x24   :  { %937 = vmatpush.bf16.msrb.mxu2 %v3609_v58  ;;  %861 = vmatmul.bf16.vlgmr.msra.gmra.mxu3 %v224_v63  ;;  %v88_v58 = vunpack.c.3.s8 %v47_v46  ;;  %v3587_v63 = vld [vmem:[%s4932_s1 + $0x108] sm:$0xff]  ;;  %v152_v7 = vand.u32 255, %v96_v59 }
  0x25   :  { %965 = vmatpush.bf16.msrb.mxu3 %v3617_v2  ;;  %v142_v2 = vand.u32 255, %v86_v54 }
  0x26   :  { %882 = vmatpush.bf16.msrb.mxu0 %v3592_v5  ;;  %v151_v5 = vand.u32 255, %v95_v57  ;;  %v144_v6 = vand.u32 255, %v88_v58  ;;  %v208_v19 = vcvt.s32.f32 %v152_v7 }
  0x27   :  { %910 = vmatpush.bf16.msrb.mxu1 %v3600_v15  ;;  %v206_v15 = vcvt.s32.f32 %v150_v3 }
  0x28   :  { %938 = vmatpush.bf16.msrb.mxu2 %v3608_v4  ;;  %v143_v4 = vand.u32 255, %v87_v56  ;;  %v200_v18 = vcvt.s32.f32 %v144_v6 }
  0x29   :  { %966 = vmatpush.bf16.msrb.mxu3 %v3616_v14  ;;  %v198_v14 = vcvt.s32.f32 %v142_v2 }
  0x2a   :  { %883 = vmatpush.bf16.msrb.mxu0 %v3591_v17  ;;  %v207_v17 = vcvt.s32.f32 %v151_v5  ;;  %v240_v25 = vpack.c.bf16 %v208_v19, %v200_v18 }
  0x2b   :  { %911 = vmatpush.bf16.msrb.mxu1 %v3599_v27  ;;  %v238_v23 = vpack.c.bf16 %v206_v15, %v198_v14 }
  0x2c   :  { %939 = vmatpush.bf16.msrb.mxu2 %v3607_v16  ;;  %v199_v16 = vcvt.s32.f32 %v143_v4 }
  0x2d   :  { %967 = vmatpush.bf16.msrb.mxu3 %v3615_v26  ;;  %v51_v26 = vld [vmem:[%s4933_s0 + $0x60] sm:$0x55] }
  0x2e   :  { %884 = vmatpush.bf16.msrb.mxu0 %v3590_v29  ;;  %v239_v24 = vpack.c.bf16 %v207_v17, %v199_v16  ;;  %v101_v27 = vunpack.c.0.s8 %v51_v26  ;;  %v103_v29 = vunpack.c.2.s8 %v51_v26  ;;  %v104_v30 = vunpack.c.3.s8 %v51_v26 }
  0x2f   :  { %912 = vmatpush.bf16.msrb.mxu1 %v3598_v39 }
  0x30   :  { %940 = vmatpush.bf16.msrb.mxu2 %v3606_v28  ;;  %v102_v28 = vunpack.c.1.s8 %v51_v26  ;;  %v157_v31 = vand.u32 255, %v101_v27  ;;  %v159_v33 = vand.u32 255, %v103_v29  ;;  %v160_v34 = vand.u32 255, %v104_v30 }
  0x31   :  { %968 = vmatpush.bf16.msrb.mxu3 %v3614_v38  ;;  %782 = vmatmul.bf16.gmra.mxu0 %v229_v42 }
  0x32   :  { %885 = vmatpush.bf16.msrb.mxu0 %v3589_v41  ;;  %810 = vmatmul.bf16.gmra.mxu1 %v230_v43  ;;  %v158_v32 = vand.u32 255, %v102_v28  ;;  %v213_v35 = vcvt.s32.f32 %v157_v31  ;;  %v215_v37 = vcvt.s32.f32 %v159_v33  ;;  %v216_v38 = vcvt.s32.f32 %v160_v34  ;;  %v40_v43 = vld [vmem:[%s4933_s0 + $0x8] sm:$0xff] }
  0x33   :  { %838 = vmatmul.bf16.gmra.mxu2 %v231_v44  ;;  %913 = vmatpush.bf16.msrb.mxu1 %v3597_v49  ;;  %v42_v44 = vld [vmem:[%s4933_s0 + $0x18] sm:$0xff]  ;;  %v58_v47 = vunpack.c.1.s8 %v40_v43  ;;  %v59_v49 = vunpack.c.2.s8 %v40_v43 }
  0x34   :  { %941 = vmatpush.bf16.msrb.mxu2 %v3605_v40  ;;  %866 = vmatmul.bf16.gmra.mxu3 %v232_v45  ;;  %v214_v36 = vcvt.s32.f32 %v158_v32  ;;  %v245_v39 = vpack.c.bf16 %v213_v35, %v213_v35  ;;  %v247_v41 = vpack.c.bf16 %v215_v37, %v215_v37  ;;  %v248_v42 = vpack.c.bf16 %v216_v38, %v216_v38 }
  0x35   :  { %969 = vmatpush.bf16.msrb.mxu3 %v3613_v48  ;;  %v57_v45 = vunpack.c.0.s8 %v40_v43  ;;  %v65_v46 = vunpack.c.0.s8 %v42_v44  ;;  %v66_v48 = vunpack.c.1.s8 %v42_v44  ;;  %v68_v52 = vunpack.c.3.s8 %v42_v44 }
  0x36   :  { %886 = vmatpush.bf16.msrb.mxu0 %v3588_v51  ;;  %v246_v40 = vpack.c.bf16 %v214_v36, %v214_v36  ;;  %v60_v51 = vunpack.c.3.s8 %v40_v43  ;;  %v114_v55 = vand.u32 255, %v58_v47  ;;  %v115_v57 = vand.u32 255, %v59_v49 }
  0x37   :  { %914 = vmatpush.bf16.msrb.mxu1 %v3596_v61  ;;  %v113_v53 = vand.u32 255, %v57_v45  ;;  %v121_v54 = vand.u32 255, %v65_v46  ;;  %v122_v56 = vand.u32 255, %v66_v48 }
  0x38   :  { %942 = vmatpush.bf16.msrb.mxu2 %v3604_v50  ;;  %v67_v50 = vunpack.c.2.s8 %v42_v44  ;;  %v116_v59 = vand.u32 255, %v60_v51  ;;  %v171_v1 = vcvt.s32.f32 %v115_v57 }
  0x39   :  { %970 = vmatpush.bf16.msrb.mxu3 %v3612_v60  ;;  %v124_v60 = vand.u32 255, %v68_v52  ;;  %v169_v61 = vcvt.s32.f32 %v113_v53  ;;  %v178_v0 = vcvt.s32.f32 %v122_v56 }
  0x3a   :  { %887 = vmatpush.bf16.msrb.mxu0 %v3587_v63  ;;  %v123_v58 = vand.u32 255, %v67_v50  ;;  %v170_v63 = vcvt.s32.f32 %v114_v55  ;;  %v172_v3 = vcvt.s32.f32 %v116_v59 }
  0x3b   :  { %915 = vmatpush.bf16.msrb.mxu1 %v3595_v9  ;;  %v180_v4 = vcvt.s32.f32 %v124_v60  ;;  %v44_v9 = vld [vmem:[%s4933_s0 + $0x28] sm:$0xff] }
  0x3c   :  { %943 = vmatpush.bf16.msrb.mxu2 %v3603_v62  ;;  %v177_v62 = vcvt.s32.f32 %v121_v54  ;;  %v179_v2 = vcvt.s32.f32 %v123_v58  ;;  %v226_v6 = vpack.c.bf16 %v178_v0, %v170_v63  ;;  %v74_v13 = vunpack.c.1.s8 %v44_v9 }
  0x3d   :  { %971 = vmatpush.bf16.msrb.mxu3 %v3611_v8  ;;  %v228_v8 = vpack.c.bf16 %v180_v4, %v172_v3  ;;  %v75_v15 = vunpack.c.2.s8 %v44_v9  ;;  %v76_v17 = vunpack.c.3.s8 %v44_v9 }
  0x3e   :  { %888 = vmatpush.bf16.msrb.mxu0 %v3586_v11  ;;  %v225_v5 = vpack.c.bf16 %v177_v62, %v169_v61  ;;  %v227_v7 = vpack.c.bf16 %v179_v2, %v171_v1  ;;  %v73_v11 = vunpack.c.0.s8 %v44_v9 }
  0x3f   :  { %916 = vmatpush.bf16.msrb.mxu1 %v3594_v21  ;;  %v130_v21 = vand.u32 255, %v74_v13 }
  0x40   :  { %944 = vmatpush.bf16.msrb.mxu2 %v3602_v10  ;;  %v46_v10 = vld [vmem:[%s4933_s0 + $0x38] sm:$0xff]  ;;  %v129_v19 = vand.u32 255, %v73_v11 }
  0x41   :  { %972 = vmatpush.bf16.msrb.mxu3 %v3610_v20  ;;  %787 = vmatmul.bf16.gmra.mxu0 %v237_v22  ;;  %v81_v12 = vunpack.c.0.s8 %v46_v10  ;;  %v82_v14 = vunpack.c.1.s8 %v46_v10  ;;  %v83_v16 = vunpack.c.2.s8 %v46_v10  ;;  %v84_v18 = vunpack.c.3.s8 %v46_v10 }
  0x42   :  { %815 = vmatmul.bf16.gmra.mxu1 %v238_v23  ;;  %v131_v23 = vand.u32 255, %v75_v15  ;;  %v185_v27 = vcvt.s32.f32 %v129_v19  ;;  %v186_v29 = vcvt.s32.f32 %v130_v21 }
  0x43   :  { %843 = vmatmul.bf16.gmra.mxu2 %v239_v24  ;;  %v137_v20 = vand.u32 255, %v81_v12  ;;  %v138_v22 = vand.u32 255, %v82_v14  ;;  %v139_v24 = vand.u32 255, %v83_v16  ;;  %v140_v26 = vand.u32 255, %v84_v18 }
  0x44   :  { %871 = vmatmul.bf16.gmra.mxu3 %v240_v25  ;;  %v132_v25 = vand.u32 255, %v76_v17  ;;  %v187_v31 = vcvt.s32.f32 %v131_v23 }
  0x45   :  { %v193_v28 = vcvt.s32.f32 %v137_v20  ;;  %v194_v30 = vcvt.s32.f32 %v138_v22  ;;  %v195_v32 = vcvt.s32.f32 %v139_v24  ;;  %v196_v34 = vcvt.s32.f32 %v140_v26  ;;  %v4090_v22 = vld [vmem:[%s4934_s2] ss:$0 sm:$0xff] }
  0x46   :  { %v188_v33 = vcvt.s32.f32 %v132_v25 }
  0x47   :  { %v233_v35 = vpack.c.bf16 %v193_v28, %v185_v27  ;;  %v234_v36 = vpack.c.bf16 %v194_v30, %v186_v29  ;;  %v235_v37 = vpack.c.bf16 %v195_v32, %v187_v31 }
  0x48   :  { %v236_v38 = vpack.c.bf16 %v196_v34, %v188_v33 }
  0x51   :  { %792 = vmatmul.bf16.gmra.mxu0 %v245_v39  ;;  %v48_v39 = vld [vmem:[%s4933_s0 + $0x48] sm:$0xff] }
  0x52   :  { %820 = vmatmul.bf16.gmra.mxu1 %v246_v40  ;;  %v50_v40 = vld [vmem:[%s4933_s0 + $0x58] sm:$0xff]  ;;  %v90_v43 = vunpack.c.1.s8 %v48_v39  ;;  %v91_v45 = vunpack.c.2.s8 %v48_v39  ;;  %v92_v47 = vunpack.c.3.s8 %v48_v39 }
  0x53   :  { %848 = vmatmul.bf16.gmra.mxu2 %v247_v41  ;;  %v89_v41 = vunpack.c.0.s8 %v48_v39  ;;  %v98_v44 = vunpack.c.1.s8 %v50_v40  ;;  %v99_v46 = vunpack.c.2.s8 %v50_v40  ;;  %v100_v48 = vunpack.c.3.s8 %v50_v40  ;;  %v3649_v39 = vld [vmem:[%s4936_s3 + $0xf8] sm:$0xff] }
  0x54   :  { %876 = vmatmul.bf16.gmra.mxu3 %v248_v42  ;;  %v97_v42 = vunpack.c.0.s8 %v50_v40  ;;  %v146_v51 = vand.u32 255, %v90_v43  ;;  %v147_v53 = vand.u32 255, %v91_v45  ;;  %v148_v55 = vand.u32 255, %v92_v47  ;;  %v3633_v40 = vld [vmem:[%s4936_s3 + $0x78] sm:$0xff]  ;;  %v3640_v45 = vld [vmem:[%s4936_s3 + $0xb0] sm:$0xff] }
  0x55   :  { %v145_v49 = vand.u32 255, %v89_v41  ;;  %v154_v52 = vand.u32 255, %v98_v44  ;;  %v155_v54 = vand.u32 255, %v99_v46  ;;  %v156_v56 = vand.u32 255, %v100_v48  ;;  %1360 = vmatpush.bf16.msra.mxu3 %v3649_v39  ;;  %1322 = vmatpush.bf16.msra.mxu1 %v3633_v40  ;;  %v3624_v46 = vld [vmem:[%s4936_s3 + $0x30] sm:$0xff] }
  0x56   :  { %v153_v50 = vand.u32 255, %v97_v42  ;;  %v202_v59 = vcvt.s32.f32 %v146_v51  ;;  %v203_v61 = vcvt.s32.f32 %v147_v53  ;;  %v204_v63 = vcvt.s32.f32 %v148_v55  ;;  %v3648_v47 = vld [vmem:[%s4936_s3 + $0xf0] sm:$0xff]  ;;  %v3639_v53 = vld [vmem:[%s4936_s3 + $0xa8] sm:$0xff] }
  0x57   :  { %v201_v57 = vcvt.s32.f32 %v145_v49  ;;  %v210_v60 = vcvt.s32.f32 %v154_v52  ;;  %v211_v62 = vcvt.s32.f32 %v155_v54  ;;  %v212_v0 = vcvt.s32.f32 %v156_v56  ;;  %v3632_v48 = vld [vmem:[%s4936_s3 + $0x70] sm:$0xff]  ;;  %v3623_v54 = vld [vmem:[%s4936_s3 + $0x28] sm:$0xff] }
  0x58   :  { %v209_v58 = vcvt.s32.f32 %v153_v50  ;;  %v3647_v55 = vld [vmem:[%s4936_s3 + $0xe8] sm:$0xff] }
  0x59   :  { %v242_v2 = vpack.c.bf16 %v210_v60, %v202_v59  ;;  %v243_v3 = vpack.c.bf16 %v211_v62, %v203_v61  ;;  %v244_v4 = vpack.c.bf16 %v212_v0, %v204_v63  ;;  %1361 = vmatpush.bf16.msra.mxu3 %v3648_v47  ;;  %1323 = vmatpush.bf16.msra.mxu1 %v3632_v48  ;;  %v3631_v56 = vld [vmem:[%s4936_s3 + $0x68] sm:$0xff]  ;;  %v3638_v61 = vld [vmem:[%s4936_s3 + $0xa0] sm:$0xff] }
  0x5a   :  { %v241_v1 = vpack.c.bf16 %v209_v58, %v201_v57  ;;  %v3622_v62 = vld [vmem:[%s4936_s3 + $0x20] sm:$0xff] }
  0x5b   :  { %v3646_v63 = vld [vmem:[%s4936_s3 + $0xe0] sm:$0xff] }
  0x5d   :  { %1362 = vmatpush.bf16.msra.mxu3 %v3647_v55  ;;  %1324 = vmatpush.bf16.msra.mxu1 %v3631_v56 }
  0x61   :  { %889 = vmatmul.bf16.vlgmr.msrb.gmra.mxu0 %v225_v5  ;;  %v52_v5 = vld [vmem:[%s4933_s0 + $0x68] sm:$0x55]  ;;  %1363 = vmatpush.bf16.msra.mxu3 %v3646_v63 }
  0x62   :  { %917 = vmatmul.bf16.vlgmr.msrb.gmra.mxu1 %v226_v6  ;;  %v105_v6 = vunpack.c.0.s8 %v52_v5  ;;  %v108_v9 = vunpack.c.3.s8 %v52_v5 }
  0x63   :  { %945 = vmatmul.bf16.vlgmr.msrb.gmra.mxu2 %v227_v7  ;;  %v106_v7 = vunpack.c.1.s8 %v52_v5 }
  0x64   :  { %973 = vmatmul.bf16.vlgmr.msrb.gmra.mxu3 %v228_v8  ;;  %v107_v8 = vunpack.c.2.s8 %v52_v5  ;;  %v161_v10 = vand.u32 255, %v105_v6  ;;  %v164_v13 = vand.u32 255, %v108_v9  ;;  %v3621_v5 = vld [vmem:[%s4936_s3 + $0x18] sm:$0xff] }
  0x65   :  { %v162_v11 = vand.u32 255, %v106_v7  ;;  %v3629_v6 = vld [vmem:[%s4936_s3 + $0x58] sm:$0xff]  ;;  %v3620_v7 = vld [vmem:[%s4936_s3 + $0x10] sm:$0xff] }
  0x66   :  { %v163_v12 = vand.u32 255, %v107_v8  ;;  %v217_v14 = vcvt.s32.f32 %v161_v10  ;;  %v220_v17 = vcvt.s32.f32 %v164_v13  ;;  %v3628_v8 = vld [vmem:[%s4936_s3 + $0x50] sm:$0xff]  ;;  %v3637_v13 = vld [vmem:[%s4936_s3 + $0x98] sm:$0xff] }
  0x67   :  { %v218_v15 = vcvt.s32.f32 %v162_v11 }
  0x68   :  { %v219_v16 = vcvt.s32.f32 %v163_v12  ;;  %v249_v18 = vpack.c.bf16 %v217_v14, %v217_v14  ;;  %v252_v21 = vpack.c.bf16 %v220_v17, %v220_v17  ;;  %v3645_v14 = vld [vmem:[%s4936_s3 + $0xd8] sm:$0xff] }
  0x69   :  { %v250_v19 = vpack.c.bf16 %v218_v15, %v218_v15  ;;  %1364 = vmatpush.bf16.msra.mxu3 %v3645_v14  ;;  %v3619_v15 = vld [vmem:[%s4936_s3 + $0x8] sm:$0xff] }
  0x6a   :  { %v251_v20 = vpack.c.bf16 %v219_v16, %v219_v16  ;;  %v3627_v16 = vld [vmem:[%s4936_s3 + $0x48] sm:$0xff] }
  0x71   :  { %894 = vmatmul.bf16.gmra.mxu0 %v233_v35 }
  0x72   :  { %922 = vmatmul.bf16.gmra.mxu1 %v234_v36 }
  0x73   :  { %950 = vmatmul.bf16.gmra.mxu2 %v235_v37  ;;  %v3641_v37 = vld [vmem:[%s4936_s3 + $0xb8] sm:$0xff] }
  0x74   :  { %978 = vmatmul.bf16.gmra.mxu3 %v236_v38  ;;  %v3625_v38 = vld [vmem:[%s4936_s3 + $0x38] sm:$0xff]  ;;  %1341 = vmatpush.bf16.msra.mxu2 %v3641_v37 }
  0x75   :  { %1303 = vmatpush.bf16.msra.mxu0 %v3625_v38  ;;  %v3634_v38 = vld [vmem:[%s4936_s3 + $0x80] sm:$0xff] }
  0x78   :  { %1342 = vmatpush.bf16.msra.mxu2 %v3640_v45 }
  0x79   :  { %1304 = vmatpush.bf16.msra.mxu0 %v3624_v46 }
  0x7c   :  { %1343 = vmatpush.bf16.msra.mxu2 %v3639_v53 }
  0x7d   :  { %1305 = vmatpush.bf16.msra.mxu0 %v3623_v54 }
  0x80   :  { %1344 = vmatpush.bf16.msra.mxu2 %v3638_v61 }
  0x81   :  { %899 = vmatmul.bf16.gmra.mxu0 %v241_v1 }
  0x82   :  { %927 = vmatmul.bf16.gmra.mxu1 %v242_v2  ;;  %v3630_v2 = vld [vmem:[%s4936_s3 + $0x60] sm:$0xff]  ;;  %1306 = vmatpush.bf16.msra.mxu0 %v3622_v62 }
  0x83   :  { %955 = vmatmul.bf16.gmra.mxu2 %v243_v3  ;;  %1325 = vmatpush.bf16.msra.mxu1 %v3630_v2 }
  0x84   :  { %983 = vmatmul.bf16.gmra.mxu3 %v244_v4  ;;  %1345 = vmatpush.bf16.msra.mxu2 %v3637_v13 }
  0x86   :  { %1307 = vmatpush.bf16.msra.mxu0 %v3621_v5 }
  0x87   :  { %1326 = vmatpush.bf16.msra.mxu1 %v3629_v6 }
  0x8a   :  { %1308 = vmatpush.bf16.msra.mxu0 %v3620_v7 }
  0x8b   :  { %1327 = vmatpush.bf16.msra.mxu1 %v3628_v8 }
  0x8e   :  { %1309 = vmatpush.bf16.msra.mxu0 %v3619_v15 }
  0x8f   :  { %1328 = vmatpush.bf16.msra.mxu1 %v3627_v16 }
  0x91   :  { %904 = vmatmul.bf16.gmra.mxu0 %v249_v18  ;;  %v3636_v18 = vld [vmem:[%s4936_s3 + $0x90] sm:$0xff] }
  0x92   :  { %932 = vmatmul.bf16.gmra.mxu1 %v250_v19  ;;  %v3644_v19 = vld [vmem:[%s4936_s3 + $0xd0] sm:$0xff]  ;;  %1346 = vmatpush.bf16.msra.mxu2 %v3636_v18 }
  0x93   :  { %960 = vmatmul.bf16.gmra.mxu2 %v251_v20  ;;  %v3618_v20 = vld [vmem:[%s4936_s3] sm:$0xff]  ;;  %1365 = vmatpush.bf16.msra.mxu3 %v3644_v19 }
  0x94   :  { %988 = vmatmul.bf16.gmra.mxu3 %v252_v21  ;;  %1310 = vmatpush.bf16.msra.mxu0 %v3618_v20 }
  0x9e   :  { %v778_v23 = vpop.f32.mrf.mxu0 }
  0x9f   :  { %v806_v24 = vpop.f32.mrf.mxu1  ;;  %v779_v25 = vadd.f32 %v4090_v22, %v778_v23 }
  0xa1   :  { %v807_v26 = vadd.f32 %v806_v24, %v779_v25  ;;  %v3626_v24 = vld [vmem:[%s4936_s3 + $0x40] sm:$0xff] }
  0xa2   :  { %1329 = vmatpush.bf16.msra.mxu1 %v3626_v24 }
  0xa6   :  { %v834_v27 = vpop.f32.mrf.mxu2  ;;  %v4093_v30 = vpop.f32.mrf.mxu0 }
  0xa7   :  { %v862_v28 = vpop.f32.mrf.mxu3  ;;  %v835_v29 = vadd.f32 %v834_v27, %v807_v26  ;;  %v4095_v31 = vpop.f32.mrf.mxu1  ;;  %v781_v17 = vadd.f32 %v4090_v22, %v4093_v30 }
  0xa9   :  { %v4097_v32 = vadd.f32 %v862_v28, %v835_v29  ;;  %v809_v27 = vadd.f32 %v4095_v31, %v781_v17  ;;  %v3635_v28 = vld [vmem:[%s4936_s3 + $0x88] sm:$0xff]  ;;  %v3642_v31 = vld [vmem:[%s4936_s3 + $0xc0] sm:$0xff] }
  0xaa   :  { %v3643_v29 = vld [vmem:[%s4936_s3 + $0xc8] sm:$0xff]  ;;  %1347 = vmatpush.bf16.msra.mxu2 %v3635_v28 }
  0xab   :  { %1366 = vmatpush.bf16.msra.mxu3 %v3643_v29 }
  0xae   :  { %v4099_v33 = vpop.f32.mrf.mxu2  ;;  %v4103_v35 = vpop.f32.mrf.mxu0  ;;  %1348 = vmatpush.bf16.msra.mxu2 %v3634_v38 }
  0xaf   :  { %v4101_v34 = vpop.f32.mrf.mxu3  ;;  %v4105_v36 = vpop.f32.mrf.mxu1  ;;  %v837_v30 = vadd.f32 %v4099_v33, %v809_v27  ;;  %v784_v37 = vadd.f32 %v4090_v22, %v4103_v35  ;;  %1367 = vmatpush.bf16.msra.mxu3 %v3642_v31 }
  0xb1   :  { %v865_v45 = vadd.f32 %v4101_v34, %v837_v30  ;;  %v812_v46 = vadd.f32 %v4105_v36, %v784_v37 }
  0xb6   :  { %v4119_v41 = vpop.f32.mrf.mxu2  ;;  %v4123_v43 = vpop.f32.mrf.mxu0 }
  0xb7   :  { %v4121_v42 = vpop.f32.mrf.mxu3  ;;  %v4125_v44 = vpop.f32.mrf.mxu1  ;;  %v840_v53 = vadd.f32 %v4119_v41, %v812_v46  ;;  %v786_v54 = vadd.f32 %v4090_v22, %v4123_v43 }
  0xb9   :  { %v868_v34 = vadd.f32 %v4121_v42, %v840_v53  ;;  %v814_v6 = vadd.f32 %v4125_v44, %v786_v54 }
  0xbe   :  { %v4139_v49 = vpop.f32.mrf.mxu2  ;;  %v4143_v51 = vpop.f32.mrf.mxu0 }
  0xbf   :  { %v4141_v50 = vpop.f32.mrf.mxu3  ;;  %v4145_v52 = vpop.f32.mrf.mxu1  ;;  %v842_v41 = vadd.f32 %v4139_v49, %v814_v6 }
  0xc1   :  { %v870_v42 = vadd.f32 %v4141_v50, %v842_v41 }
  0xc6   :  { %v4159_v57 = vpop.f32.mrf.mxu2  ;;  %v4163_v59 = vpop.f32.mrf.mxu0 }
  0xc7   :  { %v4161_v58 = vpop.f32.mrf.mxu3  ;;  %v4165_v60 = vpop.f32.mrf.mxu1 }
  0xce   :  { %v4176_v0 = vpop.f32.mrf.mxu2  ;;  %v4183_v3 = vpop.f32.mrf.mxu0 }
  0xcf   :  { %v4178_v1 = vpop.f32.mrf.mxu3  ;;  %v4185_v4 = vpop.f32.mrf.mxu1 }
  0xd6   :  { %v4199_v9 = vpop.f32.mrf.mxu2  ;;  %v795_v11 = vpop.f32.mrf.mxu0 }
  0xd7   :  { %v4201_v10 = vpop.f32.mrf.mxu3  ;;  %v823_v12 = vpop.f32.mrf.mxu1 }
  0xde   :  { %v851_v21 = vpop.f32.mrf.mxu2  ;;  %v890_v25 = vpop.f32.mrf.mxu0 }
  0xdf   :  { %v879_v23 = vpop.f32.mrf.mxu3  ;;  %v918_v26 = vpop.f32.mrf.mxu1  ;;  %v891_v48 = vadd.f32 %v890_v25, %v4097_v32  ;;  %v789_v32 = vadd.f32 %v4090_v22, %v4143_v51 }
  0xe0   :  { %v791_v23 = vadd.f32 %v4090_v22, %v4163_v59 }
  0xe1   :  { %v919_v56 = vadd.f32 %v918_v26, %v891_v48  ;;  %v817_v12 = vadd.f32 %v4145_v52, %v789_v32 }
  0xe3   :  { %v845_v51 = vadd.f32 %v4159_v57, %v817_v12 }
  0xe5   :  { %v873_v27 = vadd.f32 %v4161_v58, %v845_v51  ;;  %v794_v58 = vadd.f32 %v4090_v22, %v4183_v3 }
  0xe6   :  { %v946_v39 = vpop.f32.mrf.mxu2  ;;  %v892_v33 = vpop.f32.mrf.mxu0 }
  0xe7   :  { %v974_v40 = vpop.f32.mrf.mxu3  ;;  %v920_v47 = vpop.f32.mrf.mxu1  ;;  %v893_v35 = vadd.f32 %v892_v33, %v865_v45  ;;  %v947_v5 = vadd.f32 %v946_v39, %v919_v56  ;;  %v819_v39 = vadd.f32 %v4165_v60, %v791_v23 }
  0xe9   :  { %v921_v55 = vadd.f32 %v920_v47, %v893_v35  ;;  %v975_v43 = vadd.f32 %v974_v40, %v947_v5  ;;  %v847_v47 = vadd.f32 %v4176_v0, %v819_v39 }
  0xeb   :  { %v993_v44 = vmax.f32 %v975_v43, 0.0  ;;  %v875_v56 = vadd.f32 %v4178_v1, %v847_v47 }
  0xed   :  { %v1020_v24 = vrot.slane %v993_v44, 2 }
  0xee   :  { %v948_v61 = vpop.f32.mrf.mxu2  ;;  %v895_v36 = vpop.f32.mrf.mxu0 }
  0xef   :  { %v976_v62 = vpop.f32.mrf.mxu3  ;;  %v949_v63 = vadd.f32 %v948_v61, %v921_v55  ;;  %v923_v2 = vpop.f32.mrf.mxu1  ;;  %v896_v7 = vadd.f32 %v895_v36, %v868_v34 }
  0xf1   :  { %v977_v8 = vadd.f32 %v976_v62, %v949_v63  ;;  %v924_v11 = vadd.f32 %v923_v2, %v896_v7  ;;  %v822_v62 = vadd.f32 %v4185_v4, %v794_v58 }
  0xf3   :  { %v994_v15 = vmax.f32 %v977_v8, 0.0  ;;  %v850_v7 = vadd.f32 %v4199_v9, %v822_v62 }
  0xf5   :  { %v1003_v21 = vrot.slane %v994_v15, 2  ;;  %v1023_v52 = vrot.slane %v994_v15, 4  ;;  %v878_v43 = vadd.f32 %v4201_v10, %v850_v7 }
  0xf6   :  { %v951_v13 = vpop.f32.mrf.mxu2  ;;  %v897_v17 = vpop.f32.mrf.mxu0 }
  0xf7   :  { %v979_v14 = vpop.f32.mrf.mxu3  ;;  %v952_v16 = vadd.f32 %v951_v13, %v924_v11  ;;  %v925_v18 = vpop.f32.mrf.mxu1  ;;  %v898_v20 = vadd.f32 %v897_v17, %v870_v42  ;;  %v1021_v30 = vsel %vm1002_vm0, %v1020_v24, %v1003_v21 }
  0xf9   :  { %v980_v19 = vadd.f32 %v979_v14, %v952_v16  ;;  %v926_v26 = vadd.f32 %v925_v18, %v898_v20 }
  0xfb   :  { %v995_v49 = vmax.f32 %v980_v19, 0.0 }
  0xfd   :  { %v1004_v25 = vrot.slane %v995_v49, 2  ;;  %v1009_v50 = vrot.slane %v995_v49, 4  ;;  %v1026_v48 = vrot.slane %v995_v49, 6 }
  0xfe   :  { %v953_v28 = vpop.f32.mrf.mxu2  ;;  %v900_v57 = vpop.f32.mrf.mxu0 }
  0xff   :  { %v981_v29 = vpop.f32.mrf.mxu3  ;;  %v954_v37 = vadd.f32 %v953_v28, %v926_v26  ;;  %v928_v38 = vpop.f32.mrf.mxu1  ;;  %v1005_v31 = vsel %vm1002_vm0, %v1003_v21, %v1004_v25  ;;  %v1024_v59 = vsel %vm1008_vm1, %v1023_v52, %v1009_v50  ;;  %v901_v33 = vadd.f32 %v900_v57, %v873_v27 }
 0x100   :  { %v1035_v40 = vpack.c.bf16 %v1005_v31, %v993_v44  ;;  %v1036_v45 = vpack.c.bf16 %v1024_v59, %v1021_v30 }
 0x101   :  { %v982_v46 = vadd.f32 %v981_v29, %v954_v37  ;;  %v929_v55 = vadd.f32 %v928_v38, %v901_v33  ;;  %v3789_v29 = vld [vmem:[%s4935_s4] ss:$0 sm:$0xff] }
 0x102   :  { %1311 = vmatmul.bf16.vlgmr.msra.gmra.mxu0 %v1035_v40  ;;  %1330 = vmatmul.bf16.vlgmr.msra.gmra.mxu1 %v1036_v45 }
 0x103   :  { %v996_v35 = vmax.f32 %v982_v46, 0.0 }
 0x105   :  { %v1010_v53 = vrot.slane %v996_v35, 4  ;;  %v1015_v54 = vrot.slane %v996_v35, 6 }
 0x106   :  { %v956_v60 = vpop.f32.mrf.mxu2  ;;  %v902_v36 = vpop.f32.mrf.mxu0 }
 0x107   :  { %v984_v61 = vpop.f32.mrf.mxu3  ;;  %v1011_v34 = vsel %vm1008_vm1, %v1009_v50, %v1010_v53  ;;  %v1027_v0 = vsel %vm1014_vm2, %v1026_v48, %v1015_v54  ;;  %v957_v63 = vadd.f32 %v956_v60, %v929_v55  ;;  %v930_v2 = vpop.f32.mrf.mxu1  ;;  %v903_v6 = vadd.f32 %v902_v36, %v875_v56  ;;  %v3657_v53 = vld [vmem:[%s4937_s5 + $0x38] sm:$0xff]  ;;  %v3656_v60 = vld [vmem:[%s4937_s5 + $0x30] sm:$0xff] }
 0x108   :  { %v1037_v22 = vpack.c.bf16 %v1011_v34, %v1005_v31  ;;  %v1038_v3 = vpack.c.bf16 %v1027_v0, %v1024_v59  ;;  %v3665_v55 = vld [vmem:[%s4937_s5 + $0x78] sm:$0xff]  ;;  %1737 = vmatpush.bf16.msrb.mxu0 %v3657_v53  ;;  %v3678_v53 = vld [vmem:[%s4937_s5 + $0xe0] sm:$0xff] }
 0x109   :  { %v985_v5 = vadd.f32 %v984_v61, %v957_v63  ;;  %v931_v41 = vadd.f32 %v930_v2, %v903_v6  ;;  %1750 = vmatpush.bf16.msrb.mxu1 %v3665_v55  ;;  %v3681_v63 = vld [vmem:[%s4937_s5 + $0xf8] sm:$0xff] }
 0x10a   :  { %1349 = vmatmul.bf16.vlgmr.msra.gmra.mxu2 %v1037_v22  ;;  %1368 = vmatmul.bf16.vlgmr.msra.gmra.mxu3 %v1038_v3  ;;  %v3669_v55 = vld [vmem:[%s4937_s5 + $0x98] sm:$0xff] }
 0x10b   :  { %v997_v1 = vmax.f32 %v985_v5, 0.0  ;;  %v3655_v5 = vld [vmem:[%s4937_s5 + $0x28] sm:$0xff]  ;;  %1776 = vmatpush.bf16.msrb.mxu3 %v3681_v63 }
 0x10c   :  { %1738 = vmatpush.bf16.msrb.mxu0 %v3656_v60  ;;  %v3677_v60 = vld [vmem:[%s4937_s5 + $0xd8] sm:$0xff]  ;;  %v3675_v63 = vld [vmem:[%s4937_s5 + $0xc8] sm:$0xff] }
 0x10d   :  { %v1016_v32 = vrot.slane %v997_v1, 6  ;;  %v1040_v15 = vpack.c.bf16 %v997_v1, %v1027_v0  ;;  %v3673_v0 = vld [vmem:[%s4937_s5 + $0xb8] sm:$0xff] }
 0x10e   :  { %v958_v8 = vpop.f32.mrf.mxu2  ;;  %v905_v12 = vpop.f32.mrf.mxu0  ;;  %1763 = vmatpush.bf16.msrb.mxu2 %v3673_v0  ;;  %v3667_v0 = vld [vmem:[%s4937_s5 + $0x88] sm:$0xff] }
 0x10f   :  { %v986_v4 = vpop.f32.mrf.mxu3  ;;  %v959_v11 = vadd.f32 %v958_v8, %v931_v41  ;;  %v933_v13 = vpop.f32.mrf.mxu1  ;;  %v1017_v14 = vsel %vm1014_vm2, %v1015_v54, %v1016_v32  ;;  %v906_v17 = vadd.f32 %v905_v12, %v878_v43 }
 0x110   :  { %v1039_v42 = vpack.c.bf16 %v1017_v14, %v1011_v34  ;;  %v3664_v34 = vld [vmem:[%s4937_s5 + $0x70] sm:$0xff]  ;;  %1739 = vmatpush.bf16.msrb.mxu0 %v3655_v5 }
 0x111   :  { %v987_v16 = vadd.f32 %v986_v4, %v959_v11  ;;  %v934_v9 = vadd.f32 %v933_v13, %v906_v17  ;;  %1751 = vmatpush.bf16.msrb.mxu1 %v3664_v34  ;;  %v3654_v4 = vld [vmem:[%s4937_s5 + $0x20] sm:$0xff]  ;;  %v3676_v34 = vld [vmem:[%s4937_s5 + $0xd0] sm:$0xff] }
 0x112   :  { %1316 = vmatmul.bf16.gmra.mxu0 %v1039_v42  ;;  %1335 = vmatmul.bf16.gmra.mxu1 %v1040_v15  ;;  %v3662_v11 = vld [vmem:[%s4937_s5 + $0x60] sm:$0xff]  ;;  %v3653_v42 = vld [vmem:[%s4937_s5 + $0x18] sm:$0xff] }
 0x113   :  { %v998_v18 = vmax.f32 %v987_v16, 0.0 }
 0x114   :  { %1740 = vmatpush.bf16.msrb.mxu0 %v3654_v4 }
 0x115   :  { %v1041_v49 = vpack.c.bf16 %v998_v18, %v1017_v14  ;;  %v1031_v24 = vrot.slane %v998_v18, 2 }
 0x116   :  { %v961_v44 = vpop.f32.mrf.mxu2  ;;  %v907_v51 = vpop.f32.mrf.mxu0 }
 0x117   :  { %v989_v19 = vpop.f32.mrf.mxu3  ;;  %v962_v20 = vadd.f32 %v961_v44, %v934_v9  ;;  %v935_v21 = vpop.f32.mrf.mxu1  ;;  %v3652_v44 = vld [vmem:[%s4937_s5 + $0x10] sm:$0xff] }
 0x118   :  { %1741 = vmatpush.bf16.msrb.mxu0 %v3653_v42 }
 0x119   :  { %v990_v10 = vadd.f32 %v989_v19, %v962_v20 }
 0x11a   :  { %1354 = vmatmul.bf16.gmra.mxu2 %v1041_v49 }
 0x11b   :  { %v999_v23 = vmax.f32 %v990_v10, 0.0 }
 0x11c   :  { %1742 = vmatpush.bf16.msrb.mxu0 %v3652_v44  ;;  %v3268_v44 = vld [vmem:[%s4939_s7 + $0xc0] sm:$0xf] }
 0x11d   :  { %v1032_v52 = vrot.slane %v999_v23, 2 }
 0x11e   :  { %v963_v25 = vpop.f32.mrf.mxu2 }
 0x11f   :  { %v991_v50 = vpop.f32.mrf.mxu3  ;;  %v1033_v26 = vsel %vm1002_vm0, %v1031_v24, %v1032_v52  ;;  %v3651_v52 = vld [vmem:[%s4937_s5 + $0x8] sm:$0xff] }
 0x120   :  { %v1042_v27 = vpack.c.bf16 %v1033_v26, %v997_v1  ;;  %v3663_v1 = vld [vmem:[%s4937_s5 + $0x68] sm:$0xff]  ;;  %1743 = vmatpush.bf16.msrb.mxu0 %v3651_v52  ;;  %v3708_v52 = vld [vmem:[%s4939_s7 + $0xac] sm:$0xf0] }
 0x121   :  { %1752 = vmatpush.bf16.msrb.mxu1 %v3663_v1 }
 0x122   :  { %1373 = vmatmul.bf16.gmra.mxu3 %v1042_v27 }
 0x125   :  { %1753 = vmatpush.bf16.msrb.mxu1 %v3662_v11 }
 0x17f   :  { %v1312_v28 = vpop.f32.mrf.mxu0  ;;  %v1331_v37 = vpop.f32.mrf.mxu1 }
 0x180   :  { %v1313_v30 = vadd.f32 %v3789_v29, %v1312_v28 }
 0x182   :  { %v1332_v57 = vadd.f32 %v1331_v37, %v1313_v30 }
 0x187   :  { %v1314_v38 = vpop.f32.mrf.mxu0  ;;  %v1333_v46 = vpop.f32.mrf.mxu1 }
 0x188   :  { %v1315_v40 = vadd.f32 %v3789_v29, %v1314_v38 }
 0x18a   :  { %v1334_v33 = vadd.f32 %v1333_v46, %v1315_v40  ;;  %v3680_v40 = vld [vmem:[%s4937_s5 + $0xf0] sm:$0xff]  ;;  %v3671_v46 = vld [vmem:[%s4937_s5 + $0xa8] sm:$0xff] }
 0x18b   :  { %1777 = vmatpush.bf16.msrb.mxu3 %v3680_v40  ;;  %v3414_v40 = vld [vmem:[%s4939_s7 + $0x1f0] sm:$0xf0] }
 0x18d   :  { %v1350_v31 = vpop.f32.mrf.mxu2  ;;  %v1369_v59 = vpop.f32.mrf.mxu3 }
 0x18e   :  { %v1351_v39 = vadd.f32 %v1350_v31, %v1332_v57  ;;  %v3650_v31 = vld [vmem:[%s4937_s5] sm:$0xff] }
 0x18f   :  { %v1317_v56 = vpop.f32.mrf.mxu0  ;;  %v1336_v41 = vpop.f32.mrf.mxu1  ;;  %1744 = vmatpush.bf16.msrb.mxu0 %v3650_v31  ;;  %v3748_v31 = vld [vmem:[%s4939_s7 + $0x1ec] sm:$0xf0] }
 0x190   :  { %v1370_v45 = vadd.f32 %v1369_v59, %v1351_v39  ;;  %v1318_v6 = vadd.f32 %v3789_v29, %v1317_v56  ;;  %v3672_v59 = vld [vmem:[%s4937_s5 + $0xb0] sm:$0xff]  ;;  %v3661_v39 = vld [vmem:[%s4937_s5 + $0x58] sm:$0xff]  ;;  %v3658_v56 = vld [vmem:[%s4937_s5 + $0x40] sm:$0xff] }
 0x191   :  { %1764 = vmatpush.bf16.msrb.mxu2 %v3672_v59  ;;  %1754 = vmatpush.bf16.msrb.mxu1 %v3661_v39  ;;  %v3746_v39 = vld [vmem:[%s4939_s7 + $0x1e4] sm:$0xf] }
 0x192   :  { %v1379_v58 = vmax.f32 %v1370_v45, 0.0  ;;  %v1337_v43 = vadd.f32 %v1336_v41, %v1318_v6  ;;  %v3685_v45 = vld [vmem:[%s4937_s5 + $0x118] sm:$0xff] }
 0x193   :  { %1793 = vmatpush.bf16.msra.mxu0 %v3685_v45 }
 0x194   :  { %v1393_v61 = vrot.slane %v1379_v58, 4  ;;  %v1388_v36 = vrot.slane %v1379_v58, 2 }
 0x195   :  { %v1352_v47 = vpop.f32.mrf.mxu2  ;;  %v1371_v48 = vpop.f32.mrf.mxu3  ;;  %1765 = vmatpush.bf16.msrb.mxu2 %v3671_v46 }
 0x196   :  { %v1353_v35 = vadd.f32 %v1352_v47, %v1334_v33  ;;  %v3660_v33 = vld [vmem:[%s4937_s5 + $0x50] sm:$0xff]  ;;  %v3679_v47 = vld [vmem:[%s4937_s5 + $0xe8] sm:$0xff] }
 0x197   :  { %v1319_v12 = vpop.f32.mrf.mxu0  ;;  %v1338_v18 = vpop.f32.mrf.mxu1  ;;  %1755 = vmatpush.bf16.msrb.mxu1 %v3660_v33  ;;  %1778 = vmatpush.bf16.msrb.mxu3 %v3679_v47  ;;  %v3417_v33 = vor.u32 %v3746_v39, %v3414_v40  ;;  %v3396_v47 = vld [vmem:[%s4939_s7 + $0x1c0] sm:$0xf]  ;;  %v3715_v40 = vld [vmem:[%s4939_s7 + $0xec] sm:$0xf] }
 0x198   :  { %v1372_v54 = vadd.f32 %v1371_v48, %v1353_v35  ;;  %v1320_v15 = vadd.f32 %v3789_v29, %v1319_v12  ;;  %v3670_v35 = vld [vmem:[%s4937_s5 + $0xa0] sm:$0xff]  ;;  %v3659_v48 = vld [vmem:[%s4937_s5 + $0x48] sm:$0xff] }
 0x199   :  { %1766 = vmatpush.bf16.msrb.mxu2 %v3670_v35 }
 0x19a   :  { %v1380_v62 = vmax.f32 %v1372_v54, 0.0  ;;  %v1339_v19 = vadd.f32 %v1338_v18, %v1320_v15  ;;  %v3683_v54 = vld [vmem:[%s4937_s5 + $0x108] sm:$0xff]  ;;  %v3284_v15 = vld [vmem:[%s4939_s7 + $0xe0] sm:$0xf] }
 0x19b   :  { %1756 = vmatpush.bf16.msrb.mxu1 %v3659_v48  ;;  %1779 = vmatpush.bf16.msrb.mxu3 %v3678_v53  ;;  %v3220_v48 = vld [vmem:[%s4939_s7 + $0x60] sm:$0xf]  ;;  %v3700_v53 = vld [vmem:[%s4939_s7 + $0x6c] sm:$0xf0] }
 0x19c   :  { %v1390_v2 = vrot.slane %v1380_v62, 6  ;;  %v1384_v22 = vrot.slane %v1380_v62, 4  ;;  %v4299_v3 = vsel %vm1008_vm1, %v1393_v61, %v1380_v62  ;;  %v1400_v51 = vrot.slane %v1380_v62, 2  ;;  %v3682_v61 = vld [vmem:[%s4937_s5 + $0x100] sm:$0xff] }
 0x19d   :  { %v1355_v8 = vpop.f32.mrf.mxu2  ;;  %1767 = vmatpush.bf16.msrb.mxu2 %v3669_v55  ;;  %v3742_v55 = vld [vmem:[%s4939_s7 + $0x1c4] sm:$0xf] }
 0x19e   :  { %v1392_v7 = vsel %vm1008_vm1, %v1388_v36, %v1390_v2  ;;  %v4309_v32 = vsel %vm1008_vm1, %v1379_v58, %v1384_v22  ;;  %v1356_v13 = vadd.f32 %v1355_v8, %v1337_v43  ;;  %v3684_v58 = vld [vmem:[%s4937_s5 + $0x110] sm:$0xff]  ;;  %v3666_v36 = vld [vmem:[%s4937_s5 + $0x80] sm:$0xff] }
 0x19f   :  { %1417 = vrot.lane.b32.xlu0 %v1392_v7, %s3792_s14  ;;  %1794 = vmatpush.bf16.msra.mxu0 %v3684_v58  ;;  %v3674_v2 = vld [vmem:[%s4937_s5 + $0xc0] sm:$0xff]  ;;  %v3744_v58 = vld [vmem:[%s4939_s7 + $0x1cc] sm:$0xf0] }
 0x1a0   :  { %1757 = vmatpush.bf16.msrb.mxu1 %v3658_v56  ;;  %1780 = vmatpush.bf16.msrb.mxu3 %v3677_v60  ;;  %v3698_v60 = vld [vmem:[%s4939_s7 + $0x64] sm:$0xf] }
 0x1a3   :  { %1795 = vmatpush.bf16.msra.mxu0 %v3683_v54  ;;  %v3397_v54 = vor.u32 %v3744_v58, %v3396_v47 }
 0x1a4   :  { %1781 = vmatpush.bf16.msrb.mxu3 %v3676_v34  ;;  %v3790_v34 = vld [vmem:[%s4938_s6] ss:$0 sm:$0xff] }
 0x1a5   :  { %v1374_v14 = vpop.f32.mrf.mxu3  ;;  %v1357_v9 = vpop.f32.mrf.mxu2 }
 0x1a6   :  { %v1375_v16 = vadd.f32 %v1374_v14, %v1356_v13  ;;  %v1358_v49 = vadd.f32 %v1357_v9, %v1339_v19  ;;  %v3286_v9 = vld [vmem:[%s4939_s7 + $0xf0] sm:$0xf0]  ;;  %v3712_v19 = vld [vmem:[%s4939_s7 + $0xcc] sm:$0xf0] }
 0x1a7   :  { %1796 = vmatpush.bf16.msra.mxu0 %v3682_v61  ;;  %v3222_v61 = vld [vmem:[%s4939_s7 + $0x70] sm:$0xf0] }
 0x1a8   :  { %v1381_v17 = vmax.f32 %v1375_v16, 0.0  ;;  %1782 = vmatpush.bf16.msrb.mxu3 %v3675_v63  ;;  %v3716_v16 = vld [vmem:[%s4939_s7 + $0xec] sm:$0xf0]  ;;  %v3380_v63 = vld [vmem:[%s4939_s7 + $0x1a0] sm:$0xf] }
 0x1a9   :  { %v3285_v18 = vor.u32 %v3716_v16, %v3284_v15 }
 0x1aa   :  { %v1397_v20 = vrot.slane %v1381_v17, 4  ;;  %v1402_v21 = vrot.slane %v1381_v17, 6  ;;  %v1410_v29 = vrot.slane %v1381_v17, 2  ;;  %v1405_v30 = vsel %vm1008_vm1, %v1384_v22, %v1381_v17 }
 0x1ab   :  { %2212 = vmatpush.bf16.msra.mxu1 %v3285_v18  ;;  %v3690_v18 = vld [vmem:[%s4939_s7 + $0x24] sm:$0xf] }
 0x1ac   :  { %v1399_v10 = vsel %vm1008_vm1, %v1380_v62, %v1397_v20  ;;  %v4326_v23 = vsel %vm1008_vm1, %v1400_v51, %v1402_v21  ;;  %v3668_v62 = vld [vmem:[%s4937_s5 + $0x90] sm:$0xff]  ;;  %1783 = vmatpush.bf16.msrb.mxu3 %v3674_v2  ;;  %v3710_v51 = vld [vmem:[%s4939_s7 + $0xc4] sm:$0xf] }
 0x1ad   :  { %v1376_v24 = vpop.f32.mrf.mxu3  ;;  %1421 = vrot.lane.b32.xlu1 %v1399_v10, %s3792_s14  ;;  %1768 = vmatpush.bf16.msrb.mxu2 %v3668_v62  ;;  %v3270_v21 = vld [vmem:[%s4939_s7 + $0xd0] sm:$0xf0]  ;;  %v3269_v10 = vor.u32 %v3712_v19, %v3268_v44  ;;  %v3740_v2 = vld [vmem:[%s4939_s7 + $0x1ac] sm:$0xf0] }
 0x1ae   :  { %v1377_v25 = vadd.f32 %v1376_v24, %v1358_v49  ;;  %v3252_v24 = vld [vmem:[%s4939_s7 + $0xa0] sm:$0xf]  ;;  %v3398_v62 = vld [vmem:[%s4939_s7 + $0x1d0] sm:$0xf0] }
 0x1af   :  { %2213 = vmatpush.bf16.msra.mxu1 %v3269_v10 }
 0x1b0   :  { %v1382_v50 = vmax.f32 %v1377_v25, 0.0 }
 0x1b1   :  { %1769 = vmatpush.bf16.msrb.mxu2 %v3667_v0  ;;  %v3401_v0 = vor.u32 %v3742_v55, %v3398_v62  ;;  %v3713_v55 = vld [vmem:[%s4939_s7 + $0xd4] sm:$0xf0] }
 0x1b2   :  { %v1407_v26 = vrot.slane %v1382_v50, 4  ;;  %v1412_v27 = vrot.slane %v1382_v50, 6  ;;  %v4333_v28 = vsel %vm1008_vm1, %v1397_v20, %v1382_v50  ;;  %v3706_v50 = vld [vmem:[%s4939_s7 + $0xa4] sm:$0xf] }
 0x1b3   :  { %v1441_v8 = vpack.c.bf16 %v4333_v28, %v4333_v28 }
 0x1b4   :  { %v1414_v37 = vsel %vm1008_vm1, %v1410_v29, %v1412_v27  ;;  %v4338_v57 = vsel %vm1008_vm1, %v1381_v17, %v1407_v26  ;;  %v3714_v17 = vld [vmem:[%s4939_s7 + $0xe4] sm:$0xf]  ;;  %v3254_v26 = vld [vmem:[%s4939_s7 + $0xb0] sm:$0xf0]  ;;  %v3253_v27 = vor.u32 %v3708_v52, %v3252_v24  ;;  %v3236_v29 = vld [vmem:[%s4939_s7 + $0x80] sm:$0xf] }
 0x1b5   :  { %v3783_v38 = vpack.i.bf16 %v1414_v37, %v1405_v30  ;;  %1770 = vmatpush.bf16.msrb.mxu2 %v3666_v36  ;;  %v3289_v20 = vor.u32 %v3714_v17, %v3286_v9  ;;  %v3257_v28 = vor.u32 %v3706_v50, %v3254_v26  ;;  %v3704_v30 = vld [vmem:[%s4939_s7 + $0x8c] sm:$0xf0]  ;;  %v3412_v37 = vld [vmem:[%s4939_s7 + $0x1e0] sm:$0xf]  ;;  %v3221_v36 = vor.u32 %v3700_v53, %v3220_v48  ;;  %v3350_v24 = vld [vmem:[%s4939_s7 + $0x170] sm:$0xf0] }
 0x1b6   :  { %v3413_v59 = vor.u32 %v3748_v31, %v3412_v37  ;;  %2214 = vmatpush.bf16.msra.mxu1 %v3253_v27  ;;  %v3237_v46 = vor.u32 %v3704_v30, %v3236_v29  ;;  %v3188_v17 = vld [vmem:[%s4939_s7 + $0x20] sm:$0xf]  ;;  %v3686_v30 = vld [vmem:[%s4939_s7 + $0x4] sm:$0xf]  ;;  %v3292_v31 = vld [vmem:[%s4939_s7 + $0xe8] sm:$0xf] }
 0x1b7   :  { %3784 = vrot.lane.b32.xlu0 %v3783_v38, %s3792_s14  ;;  %2238 = vmatpush.bf16.msra.mxu3 %v3289_v20  ;;  %v3238_v38 = vld [vmem:[%s4939_s7 + $0x90] sm:$0xf0]  ;;  %v3172_v27 = vld [vmem:[%s4939_s7] sm:$0xf] }
 0x1b8   :  { %v3190_v20 = vld [vmem:[%s4939_s7 + $0x30] sm:$0xf0] }
 0x1b9   :  { %2225 = vmatpush.bf16.msra.mxu2 %v3413_v59  ;;  %v3193_v26 = vor.u32 %v3690_v18, %v3190_v20  ;;  %v3717_v59 = vld [vmem:[%s4939_s7 + $0xf4] sm:$0xf0]  ;;  %v3316_v18 = vld [vmem:[%s4939_s7 + $0x120] sm:$0xf]  ;;  %v3318_v20 = vld [vmem:[%s4939_s7 + $0x130] sm:$0xf0] }
 0x1ba   :  { %2215 = vmatpush.bf16.msra.mxu1 %v3237_v46  ;;  %v3293_v58 = vor.u32 %v3717_v59, %v3292_v31  ;;  %v3749_v59 = vld [vmem:[%s4939_s7 + $0x1f4] sm:$0xf0] }
 0x1bd   :  { %2226 = vmatpush.bf16.msra.mxu2 %v3397_v54  ;;  %v3276_v54 = vld [vmem:[%s4939_s7 + $0xc8] sm:$0xf] }
 0x1be   :  { %2216 = vmatpush.bf16.msra.mxu1 %v3221_v36  ;;  %v3262_v36 = vld [vmem:[%s4939_s7 + $0xb8] sm:$0xf0] }
 0x211   :  { %v1418_v22 = vpop.permute.xlu0 %1417 }
 0x212   :  { %v1433_v5 = vsel %vm1432_vm3, %v4309_v32, %v1418_v22  ;;  %v3738_v22 = vld [vmem:[%s4939_s7 + $0x1a4] sm:$0xf] }
 0x213   :  { %v1437_v6 = vpack.c.bf16 %v1433_v5, %v1433_v5  ;;  %v3382_v5 = vld [vmem:[%s4939_s7 + $0x1b0] sm:$0xf0] }
 0x215   :  { %1745 = vmatmul.bf16.vlgmr.msrb.gmra.mxu0 %v1437_v6  ;;  %v3225_v6 = vor.u32 %v3698_v60, %v3222_v61  ;;  %v3278_v60 = vld [vmem:[%s4939_s7 + $0xd8] sm:$0xf0]  ;;  %v3277_v61 = vor.u32 %v3713_v55, %v3276_v54  ;;  %v3745_v54 = vld [vmem:[%s4939_s7 + $0x1d4] sm:$0xf0]  ;;  %v3687_v55 = vld [vmem:[%s4939_s7 + $0xc] sm:$0xf] }
 0x216   :  { %2251 = vmatpush.bf16.msrb.mxu0 %v3417_v33 }
 0x21a   :  { %2252 = vmatpush.bf16.msrb.mxu0 %v3401_v0  ;;  %v3709_v0 = vld [vmem:[%s4939_s7 + $0xb4] sm:$0xf0] }
 0x21f   :  { %v1422_v7 = vpop.permute.xlu1 %1421 }
 0x220   :  { %v1434_v1 = vsel %vm1432_vm3, %v4299_v3, %v1422_v7  ;;  %v3204_v7 = vld [vmem:[%s4939_s7 + $0x40] sm:$0xf] }
 0x221   :  { %v1438_v41 = vpack.c.bf16 %v1434_v1, %v1434_v1  ;;  %v3696_v1 = vld [vmem:[%s4939_s7 + $0x4c] sm:$0xf0] }
 0x223   :  { %1758 = vmatmul.bf16.vlgmr.msrb.gmra.mxu1 %v1438_v41  ;;  %v3694_v41 = vld [vmem:[%s4939_s7 + $0x44] sm:$0xf] }
 0x225   :  { %3169 = vmatmul.msk.bf16.vlgmr.msra.gmra.mxu0 %vm1432_vm3, %v1441_v8  ;;  %v3381_v8 = vor.u32 %v3740_v2, %v3380_v63  ;;  %v3707_v63 = vld [vmem:[%s4939_s7 + $0xac] sm:$0xf] }
 0x227   :  { %2227 = vmatpush.bf16.msra.mxu2 %v3381_v8 }
 0x229   :  { %v3785_v4 = vpop.permute.xlu0 %3784 }
 0x22a   :  { %v3787_v43 = vunpack.i.h.bf16 %v3785_v4  ;;  %v3786_v11 = vunpack.i.l.bf16 %v3785_v4  ;;  %v3206_v4 = vld [vmem:[%s4939_s7 + $0x50] sm:$0xf0] }
 0x22b   :  { %v3209_v16 = vor.u32 %v3694_v41, %v3206_v4  ;;  %v3246_v41 = vld [vmem:[%s4939_s7 + $0x98] sm:$0xf0]  ;;  %v3332_v4 = vld [vmem:[%s4939_s7 + $0x140] sm:$0xf] }
 0x22c   :  { %v1436_v12 = vsel %vm1432_vm3, %v4338_v57, %v3787_v43  ;;  %v1435_v32 = vsel %vm1432_vm3, %v4326_v23, %v3786_v11  ;;  %v3273_v23 = vor.u32 %v3710_v51, %v3270_v21  ;;  %v3702_v57 = vld [vmem:[%s4939_s7 + $0x84] sm:$0xf]  ;;  %v3385_v43 = vor.u32 %v3738_v22, %v3382_v5  ;;  %v3364_v11 = vld [vmem:[%s4939_s7 + $0x180] sm:$0xf]  ;;  %v3244_v5 = vld [vmem:[%s4939_s7 + $0x88] sm:$0xf] }
 0x22d   :  { %v1440_v13 = vpack.c.bf16 %v1436_v12, %v1436_v12  ;;  %v1439_v14 = vpack.c.bf16 %v1435_v32, %v1435_v32  ;;  %v3241_v35 = vor.u32 %v3702_v57, %v3238_v38  ;;  %v3736_v12 = vld [vmem:[%s4939_s7 + $0x18c] sm:$0xf0]  ;;  %v3348_v21 = vld [vmem:[%s4939_s7 + $0x160] sm:$0xf]  ;;  %v3174_v38 = vld [vmem:[%s4939_s7 + $0x10] sm:$0xf0]  ;;  %v3265_v22 = vor.u32 %v3707_v63, %v3262_v36 }
 0x22e   :  { %2239 = vmatpush.bf16.msra.mxu3 %v3273_v23  ;;  %v3365_v9 = vor.u32 %v3736_v12, %v3364_v11  ;;  %2253 = vmatpush.bf16.msrb.mxu0 %v3385_v43  ;;  %v3730_v23 = vld [vmem:[%s4939_s7 + $0x164] sm:$0xf]  ;;  %v3177_v47 = vor.u32 %v3686_v30, %v3174_v38  ;;  %v3728_v43 = vld [vmem:[%s4939_s7 + $0x14c] sm:$0xf0]  ;;  %v3196_v30 = vld [vmem:[%s4939_s7 + $0x28] sm:$0xf] }
 0x22f   :  { %1771 = vmatmul.bf16.vlgmr.msrb.gmra.mxu2 %v1439_v14  ;;  %1784 = vmatmul.bf16.vlgmr.msrb.gmra.mxu3 %v1440_v13  ;;  %v3734_v13 = vld [vmem:[%s4939_s7 + $0x184] sm:$0xf]  ;;  %v3366_v14 = vld [vmem:[%s4939_s7 + $0x190] sm:$0xf0]  ;;  %v3353_v37 = vor.u32 %v3730_v23, %v3350_v24  ;;  %v3333_v12 = vor.u32 %v3728_v43, %v3332_v4  ;;  %v3695_v23 = vld [vmem:[%s4939_s7 + $0x4c] sm:$0xf] }
 0x230   :  { %v3369_v51 = vor.u32 %v3734_v13, %v3366_v14  ;;  %2228 = vmatpush.bf16.msra.mxu2 %v3365_v9  ;;  %v3726_v11 = vld [vmem:[%s4939_s7 + $0x144] sm:$0xf]  ;;  %v3228_v13 = vld [vmem:[%s4939_s7 + $0x68] sm:$0xf]  ;;  %v3701_v14 = vld [vmem:[%s4939_s7 + $0x74] sm:$0xf0] }
 0x231   :  { %v3724_v9 = vld [vmem:[%s4939_s7 + $0x12c] sm:$0xf0]  ;;  %v3214_v24 = vld [vmem:[%s4939_s7 + $0x58] sm:$0xf0]  ;;  %v3388_v36 = vld [vmem:[%s4939_s7 + $0x1a8] sm:$0xf] }
 0x232   :  { %2240 = vmatpush.bf16.msra.mxu3 %v3257_v28  ;;  %v3688_v28 = vld [vmem:[%s4939_s7 + $0xc] sm:$0xf0]  ;;  %2254 = vmatpush.bf16.msrb.mxu0 %v3369_v51  ;;  %v3212_v51 = vld [vmem:[%s4939_s7 + $0x48] sm:$0xf]  ;;  %v3374_v43 = vld [vmem:[%s4939_s7 + $0x198] sm:$0xf0] }
 0x233   :  { %v3173_v39 = vor.u32 %v3688_v28, %v3172_v27  ;;  %v3718_v27 = vld [vmem:[%s4939_s7 + $0x104] sm:$0xf]  ;;  %v3302_v28 = vld [vmem:[%s4939_s7 + $0x110] sm:$0xf0] }
 0x234   :  { %v3305_v38 = vor.u32 %v3718_v27, %v3302_v28  ;;  %v3719_v27 = vld [vmem:[%s4939_s7 + $0x10c] sm:$0xf]  ;;  %v3310_v28 = vld [vmem:[%s4939_s7 + $0x118] sm:$0xf0] }
 0x236   :  { %2241 = vmatpush.bf16.msra.mxu3 %v3241_v35  ;;  %2255 = vmatpush.bf16.msrb.mxu0 %v3353_v37  ;;  %v3693_v37 = vld [vmem:[%s4939_s7 + $0x34] sm:$0xf0] }
 0x237   :  { %v3197_v31 = vor.u32 %v3693_v37, %v3196_v30  ;;  %v3313_v30 = vor.u32 %v3719_v27, %v3310_v28 }
 0x23a   :  { %2242 = vmatpush.bf16.msra.mxu3 %v3225_v6  ;;  %v3705_v6 = vld [vmem:[%s4939_s7 + $0x94] sm:$0xf0] }
 0x23e   :  { %2243 = vmatpush.bf16.msra.mxu3 %v3209_v16  ;;  %v3699_v16 = vld [vmem:[%s4939_s7 + $0x6c] sm:$0xf] }
 0x242   :  { %2244 = vmatpush.bf16.msra.mxu3 %v3193_v26  ;;  %v3720_v26 = vld [vmem:[%s4939_s7 + $0x10c] sm:$0xf0] }
 0x246   :  { %2245 = vmatpush.bf16.msra.mxu3 %v3177_v47  ;;  %v3422_v47 = vld [vmem:[%s4939_s7 + $0x1f8] sm:$0xf0] }
 0x292   :  { %v4421_v3 = vpop.f32.mrf.mxu0 }
 0x293   :  { %v1747_v32 = vadd.f32 %v3790_v34, %v4421_v3  ;;  %v3692_v3 = vld [vmem:[%s4939_s7 + $0x2c] sm:$0xf0]  ;;  %v3260_v34 = vld [vmem:[%s4939_s7 + $0xa8] sm:$0xf] }
 0x294   :  { %v3189_v52 = vor.u32 %v3692_v3, %v3188_v17  ;;  %v3261_v2 = vor.u32 %v3709_v0, %v3260_v34  ;;  %v3230_v17 = vld [vmem:[%s4939_s7 + $0x78] sm:$0xf0] }
 0x295   :  { %v3233_v3 = vor.u32 %v3699_v16, %v3230_v17  ;;  %v3340_v16 = vld [vmem:[%s4939_s7 + $0x148] sm:$0xf]  ;;  %v3729_v17 = vld [vmem:[%s4939_s7 + $0x154] sm:$0xf0] }
 0x29a   :  { %v1748_v42 = vpop.f32.mrf.mxu0 }
 0x29b   :  { %v3205_v42 = vor.u32 %v3696_v1, %v3204_v7  ;;  %v3703_v7 = vld [vmem:[%s4939_s7 + $0x8c] sm:$0xf]  ;;  %v3245_v1 = vor.u32 %v3705_v6, %v3244_v5  ;;  %v3390_v6 = vld [vmem:[%s4939_s7 + $0x1b8] sm:$0xf0] }
 0x29c   :  { %v3249_v8 = vor.u32 %v3703_v7, %v3246_v41  ;;  %v3737_v41 = vld [vmem:[%s4939_s7 + $0x194] sm:$0xf0] }
 0x29d   :  { %2217 = vmatpush.bf16.msra.mxu1 %v3205_v42 }
 0x2a0   :  { %v4447_v49 = vpop.f32.mrf.mxu1 }
 0x2a1   :  { %v1760_v15 = vadd.f32 %v4447_v49, %v1747_v32  ;;  %v3732_v49 = vld [vmem:[%s4939_s7 + $0x16c] sm:$0xf0]  ;;  %2218 = vmatpush.bf16.msra.mxu1 %v3189_v52  ;;  %v3334_v32 = vld [vmem:[%s4939_s7 + $0x150] sm:$0xf0]  ;;  %v3300_v52 = vld [vmem:[%s4939_s7 + $0x100] sm:$0xf] }
 0x2a2   :  { %v4455_v25 = vpop.f32.mrf.mxu0  ;;  %v3349_v29 = vor.u32 %v3732_v49, %v3348_v21  ;;  %v3337_v42 = vor.u32 %v3726_v11, %v3334_v32  ;;  %v3697_v21 = vld [vmem:[%s4939_s7 + $0x54] sm:$0xf0] }
 0x2a3   :  { %v3733_v32 = vld [vmem:[%s4939_s7 + $0x174] sm:$0xf0] }
 0x2a4   :  { %2229 = vmatpush.bf16.msra.mxu2 %v3349_v29  ;;  %2256 = vmatpush.bf16.msrb.mxu0 %v3337_v42  ;;  %v3301_v29 = vor.u32 %v3720_v26, %v3300_v52  ;;  %v3358_v42 = vld [vmem:[%s4939_s7 + $0x178] sm:$0xf0]  ;;  %v3721_v26 = vld [vmem:[%s4939_s7 + $0x114] sm:$0xf0] }
 0x2a5   :  { %2219 = vmatpush.bf16.msra.mxu1 %v3173_v39  ;;  %v3691_v39 = vld [vmem:[%s4939_s7 + $0x2c] sm:$0xf] }
 0x2a8   :  { %v1761_v45 = vpop.f32.mrf.mxu1  ;;  %2230 = vmatpush.bf16.msra.mxu2 %v3333_v12  ;;  %v3356_v12 = vld [vmem:[%s4939_s7 + $0x168] sm:$0xf] }
 0x2a9   :  { %2264 = vmatpush.bf16.msrb.mxu1 %v3293_v58  ;;  %v3180_v58 = vld [vmem:[%s4939_s7 + $0x8] sm:$0xf] }
 0x2aa   :  { %v1800_v56 = vpop.f32.mrf.mxu0 }
 0x2ab   :  { %v3711_v56 = vld [vmem:[%s4939_s7 + $0xcc] sm:$0xf] }
 0x2ac   :  { %v3281_v62 = vor.u32 %v3711_v56, %v3278_v60  ;;  %v3182_v56 = vld [vmem:[%s4939_s7 + $0x18] sm:$0xf0]  ;;  %v3743_v60 = vld [vmem:[%s4939_s7 + $0x1cc] sm:$0xf] }
 0x2ad   :  { %2265 = vmatpush.bf16.msrb.mxu1 %v3277_v61  ;;  %v3185_v0 = vor.u32 %v3687_v55, %v3182_v56  ;;  %v3773_v55 = vld [vmem:[%s4941_s9 + $0xb8] sm:$0xff]  ;;  %v3759_v56 = vld [vmem:[%s4941_s9 + $0x48] sm:$0xff] }
 0x2b1   :  { %2266 = vmatpush.bf16.msrb.mxu1 %v3261_v2  ;;  %v3741_v2 = vld [vmem:[%s4939_s7 + $0x1b4] sm:$0xf0] }
 0x2b2   :  { %v1772_v44 = vpop.f32.mrf.mxu2  ;;  %v1785_v19 = vpop.f32.mrf.mxu3  ;;  %v3389_v5 = vor.u32 %v3741_v2, %v3388_v36  ;;  %v3771_v36 = vld [vmem:[%s4941_s9 + $0xa8] sm:$0xff]  ;;  %v3777_v2 = vld [vmem:[%s4941_s9 + $0xd8] sm:$0xff] }
 0x2b3   :  { %v1773_v10 = vadd.f32 %v1772_v44, %v1760_v15  ;;  %v3229_v15 = vor.u32 %v3701_v14, %v3228_v13  ;;  %v3722_v44 = vld [vmem:[%s4939_s7 + $0x124] sm:$0xf]  ;;  %v3731_v13 = vld [vmem:[%s4939_s7 + $0x16c] sm:$0xf]  ;;  %v3357_v14 = vor.u32 %v3733_v32, %v3356_v12 }
 0x2b4   :  { %v3321_v49 = vor.u32 %v3722_v44, %v3318_v20  ;;  %v3725_v20 = vld [vmem:[%s4939_s7 + $0x134] sm:$0xf0]  ;;  %v3767_v12 = vld [vmem:[%s4941_s9 + $0x88] sm:$0xff] }
 0x2b5   :  { %v1786_v50 = vadd.f32 %v1785_v19, %v1773_v10  ;;  %2267 = vmatpush.bf16.msrb.mxu1 %v3245_v1  ;;  %v3317_v19 = vor.u32 %v3724_v9, %v3316_v18  ;;  %v3213_v10 = vor.u32 %v3697_v21, %v3212_v51  ;;  %v3372_v1 = vld [vmem:[%s4939_s7 + $0x188] sm:$0xf]  ;;  %v3342_v18 = vld [vmem:[%s4939_s7 + $0x158] sm:$0xf0]  ;;  %v3341_v9 = vor.u32 %v3729_v17, %v3340_v16  ;;  %v3723_v21 = vld [vmem:[%s4939_s7 + $0x12c] sm:$0xf] }
 0x2b6   :  { %2257 = vmatpush.bf16.msrb.mxu0 %v3321_v49  ;;  %v3373_v4 = vor.u32 %v3737_v41, %v3372_v1  ;;  %v3326_v49 = vld [vmem:[%s4939_s7 + $0x138] sm:$0xf0] }
 0x2b7   :  { %v1799_v57 = vadd.f32 %v4455_v25, %v1786_v50  ;;  %v3294_v25 = vld [vmem:[%s4939_s7 + $0xf8] sm:$0xf0]  ;;  %v3217_v50 = vor.u32 %v3695_v23, %v3214_v24  ;;  %2231 = vmatpush.bf16.msra.mxu2 %v3317_v19  ;;  %v3324_v19 = vld [vmem:[%s4939_s7 + $0x128] sm:$0xf]  ;;  %v3329_v52 = vor.u32 %v3723_v21, %v3326_v49 }
 0x2b8   :  { %v3297_v53 = vor.u32 %v3715_v40, %v3294_v25  ;;  %v3198_v40 = vld [vmem:[%s4939_s7 + $0x38] sm:$0xf0]  ;;  %v3325_v24 = vor.u32 %v3725_v20, %v3324_v19 }
 0x2b9   :  { %v4601_v45 = vmax.f32 %v1799_v57, 0.0  ;;  %2268 = vmatpush.bf16.msrb.mxu1 %v3229_v15  ;;  %v3420_v57 = vld [vmem:[%s4939_s7 + $0x1e8] sm:$0xf]  ;;  %v3361_v15 = vor.u32 %v3731_v13, %v3358_v42  ;;  %v3769_v1 = vld [vmem:[%s4941_s9 + $0x98] sm:$0xff]  ;;  %v1882_v42 = vld [vmem:[%s4942_s8] sm:$0xf] }
 0x2ba   :  { %v1774_v46 = vpop.f32.mrf.mxu2  ;;  %v1787_v33 = vpop.f32.mrf.mxu3  ;;  %2290 = vmatpush.bf16.msrb.mxu3 %v3297_v53  ;;  %v3421_v25 = vor.u32 %v3749_v59, %v3420_v57  ;;  %v3404_v53 = vld [vmem:[%s4939_s7 + $0x1c8] sm:$0xf]  ;;  %2258 = vmatpush.bf16.msrb.mxu0 %v3305_v38  ;;  %v3765_v59 = vld [vmem:[%s4941_s9 + $0x78] sm:$0xff] }
 0x2bb   :  { %v1810_v35 = vrot.slane %v4601_v45, 6  ;;  %v1804_v48 = vrot.slane %v4601_v45, 2  ;;  %v3201_v46 = vor.u32 %v3691_v39, %v3198_v40  ;;  %v3747_v33 = vld [vmem:[%s4939_s7 + $0x1ec] sm:$0xf]  ;;  %2232 = vmatpush.bf16.msra.mxu2 %v3301_v29  ;;  %v3405_v34 = vor.u32 %v3745_v54, %v3404_v53  ;;  %v3764_v39 = vld [vmem:[%s4941_s9 + $0x70] sm:$0xff]  ;;  %v3753_v54 = vld [vmem:[%s4941_s9 + $0x18] sm:$0xff] }
 0x2bc   :  { %v1808_v37 = vrot.slane %v4601_v45, 4  ;;  %v3763_v40 = vld [vmem:[%s4941_s9 + $0x68] sm:$0xff]  ;;  %v3780_v53 = vld [vmem:[%s4941_s9 + $0xf0] sm:$0xff] }
 0x2bd   :  { %1811 = vrot.lane.b32.xlu1 %v1810_v35, %s3792_s14  ;;  %1805 = vrot.lane.b32.xlu2 %v1804_v48, %s3792_s14  ;;  %v3425_v35 = vor.u32 %v3747_v33, %v3422_v47  ;;  %v3689_v48 = vld [vmem:[%s4939_s7 + $0x14] sm:$0xf0]  ;;  %v3755_v33 = vld [vmem:[%s4941_s9 + $0x28] sm:$0xff] }
 0x2be   :  { %2291 = vmatpush.bf16.msrb.mxu3 %v3281_v62  ;;  %2269 = vmatpush.bf16.msrb.mxu1 %v3213_v10  ;;  %v3181_v61 = vor.u32 %v3689_v48, %v3180_v58  ;;  %v3406_v62 = vld [vmem:[%s4939_s7 + $0x1d8] sm:$0xf0]  ;;  %v3760_v48 = vld [vmem:[%s4941_s9 + $0x50] sm:$0xff] }
 0x2bf   :  { %2277 = vmatpush.bf16.msrb.mxu2 %v3421_v25  ;;  %2303 = vmatpush.bf16.msra.mxu0 %v3425_v35  ;;  %v3409_v63 = vor.u32 %v3743_v60, %v3406_v62  ;;  %v3756_v25 = vld [vmem:[%s4941_s9 + $0x30] sm:$0xff]  ;;  %v3761_v47 = vld [vmem:[%s4941_s9 + $0x58] sm:$0xff]  ;;  %v3754_v35 = vld [vmem:[%s4941_s9 + $0x20] sm:$0xff] }
 0x2c0   :  { %v3781_v58 = vld [vmem:[%s4941_s9 + $0xf8] sm:$0xff]  ;;  %v3779_v60 = vld [vmem:[%s4941_s9 + $0xe8] sm:$0xff]  ;;  %v3772_v62 = vld [vmem:[%s4941_s9 + $0xb0] sm:$0xff] }
 0x2c2   :  { %2292 = vmatpush.bf16.msrb.mxu3 %v3265_v22  ;;  %2270 = vmatpush.bf16.msrb.mxu1 %v3197_v31  ;;  %v3739_v22 = vld [vmem:[%s4939_s7 + $0x1ac] sm:$0xf] }
 0x2c3   :  { %2278 = vmatpush.bf16.msrb.mxu2 %v3405_v34  ;;  %2304 = vmatpush.bf16.msra.mxu0 %v3409_v63  ;;  %v3393_v7 = vor.u32 %v3739_v22, %v3390_v6  ;;  %v3758_v34 = vld [vmem:[%s4941_s9 + $0x40] sm:$0xff]  ;;  %v3751_v63 = vld [vmem:[%s4941_s9 + $0x8] sm:$0xff] }
 0x2c4   :  { %v3770_v6 = vld [vmem:[%s4941_s9 + $0xa0] sm:$0xff] }
 0x2c6   :  { %2293 = vmatpush.bf16.msrb.mxu3 %v3249_v8  ;;  %2271 = vmatpush.bf16.msrb.mxu1 %v3181_v61  ;;  %v3735_v8 = vld [vmem:[%s4939_s7 + $0x18c] sm:$0xf]  ;;  %v3752_v61 = vld [vmem:[%s4941_s9 + $0x10] sm:$0xff] }
 0x2c7   :  { %2279 = vmatpush.bf16.msrb.mxu2 %v3389_v5  ;;  %2305 = vmatpush.bf16.msra.mxu0 %v3393_v7  ;;  %v3377_v11 = vor.u32 %v3735_v8, %v3374_v43  ;;  %v3750_v5 = vld [vmem:[%s4941_s9] sm:$0xff]  ;;  %v3776_v7 = vld [vmem:[%s4941_s9 + $0xd0] sm:$0xff]  ;;  %v3775_v8 = vld [vmem:[%s4941_s9 + $0xc8] sm:$0xff] }
 0x2c8   :  { %v3768_v43 = vld [vmem:[%s4941_s9 + $0x90] sm:$0xff] }
 0x2ca   :  { %2294 = vmatpush.bf16.msrb.mxu3 %v3233_v3  ;;  %v3727_v3 = vld [vmem:[%s4939_s7 + $0x14c] sm:$0xf] }
 0x2cb   :  { %2280 = vmatpush.bf16.msrb.mxu2 %v3373_v4  ;;  %2306 = vmatpush.bf16.msra.mxu0 %v3377_v11  ;;  %v3345_v44 = vor.u32 %v3727_v3, %v3342_v18  ;;  %v3774_v11 = vld [vmem:[%s4941_s9 + $0xc0] sm:$0xff] }
 0x2ce   :  { %2295 = vmatpush.bf16.msrb.mxu3 %v3217_v50  ;;  %v3308_v50 = vld [vmem:[%s4939_s7 + $0x108] sm:$0xf] }
 0x2cf   :  { %2281 = vmatpush.bf16.msrb.mxu2 %v3357_v14  ;;  %2307 = vmatpush.bf16.msra.mxu0 %v3361_v15  ;;  %v3309_v29 = vor.u32 %v3721_v26, %v3308_v50  ;;  %v3766_v14 = vld [vmem:[%s4941_s9 + $0x80] sm:$0xff]  ;;  %v1885_v15 = vperm.slane %v1882_v42, 1 }
 0x2d2   :  { %2296 = vmatpush.bf16.msrb.mxu3 %v3201_v46  ;;  %v3762_v46 = vld [vmem:[%s4941_s9 + $0x60] sm:$0xff] }
 0x2d3   :  { %2282 = vmatpush.bf16.msrb.mxu2 %v3341_v9  ;;  %2308 = vmatpush.bf16.msra.mxu0 %v3345_v44  ;;  %v1884_v9 = vperm.slane %v1882_v42, 0 }
 0x2d6   :  { %2297 = vmatpush.bf16.msrb.mxu3 %v3185_v0  ;;  %v3778_v0 = vld [vmem:[%s4941_s9 + $0xe0] sm:$0xff] }
 0x2d7   :  { %2283 = vmatpush.bf16.msrb.mxu2 %v3325_v24  ;;  %2309 = vmatpush.bf16.msra.mxu0 %v3329_v52  ;;  %v1887_v52 = vperm.slane %v1882_v42, 3 }
 0x2db   :  { %2284 = vmatpush.bf16.msrb.mxu2 %v3309_v29  ;;  %2310 = vmatpush.bf16.msra.mxu0 %v3313_v30  ;;  %v1886_v29 = vperm.slane %v1882_v42, 2 }
 0x317   :  { %v1806_v51 = vpop.permute.xlu2 %1805 }
 0x318   :  { %v1814_v10 = vsel %vm1432_vm3, %v4601_v45, %v1806_v51  ;;  %v3757_v45 = vld [vmem:[%s4941_s9 + $0x38] sm:$0xff] }
 0x319   :  { %v1816_v23 = vpack.c.bf16 %v1814_v10, %v1814_v10 }
 0x31b   :  { %2220 = vmatmul.bf16.vlgmr.msra.gmra.mxu1 %v1816_v23  ;;  %2246 = vmatmul.bf16.vlgmr.msra.gmra.mxu3 %v1816_v23 }
 0x31c   :  { %2584 = vmatpush.bf16.msra.mxu1 %v3757_v45  ;;  %2610 = vmatpush.bf16.msra.mxu3 %v3773_v55 }
 0x320   :  { %2585 = vmatpush.bf16.msra.mxu1 %v3756_v25  ;;  %2611 = vmatpush.bf16.msra.mxu3 %v3772_v62 }
 0x324   :  { %2586 = vmatpush.bf16.msra.mxu1 %v3755_v33  ;;  %2612 = vmatpush.bf16.msra.mxu3 %v3771_v36 }
 0x328   :  { %2587 = vmatpush.bf16.msra.mxu1 %v3754_v35  ;;  %2613 = vmatpush.bf16.msra.mxu3 %v3770_v6 }
 0x32b   :  { %2272 = vmatmul.bf16.vlgmr.msrb.gmra.mxu1 %v1816_v23  ;;  %2298 = vmatmul.bf16.vlgmr.msrb.gmra.mxu3 %v1816_v23 }
 0x32c   :  { %2588 = vmatpush.bf16.msra.mxu1 %v3753_v54  ;;  %2614 = vmatpush.bf16.msra.mxu3 %v3769_v1 }
 0x32f   :  { %v1812_v57 = vpop.permute.xlu1 %1811 }
 0x330   :  { %v1815_v38 = vsel %vm1432_vm3, %v1808_v37, %v1812_v57  ;;  %2589 = vmatpush.bf16.msra.mxu1 %v3752_v61  ;;  %2615 = vmatpush.bf16.msra.mxu3 %v3768_v43 }
 0x331   :  { %v1817_v31 = vpack.c.bf16 %v1815_v38, %v1815_v38 }
 0x333   :  { %2233 = vmatmul.bf16.vlgmr.msra.gmra.mxu2 %v1817_v31  ;;  %2259 = vmatmul.bf16.vlgmr.msrb.gmra.mxu0 %v1817_v31 }
 0x334   :  { %2597 = vmatpush.bf16.msra.mxu2 %v3765_v59  ;;  %2623 = vmatpush.bf16.msrb.mxu0 %v3781_v58 }
 0x335   :  { %2590 = vmatpush.bf16.msra.mxu1 %v3751_v63  ;;  %2616 = vmatpush.bf16.msra.mxu3 %v3767_v12 }
 0x338   :  { %2598 = vmatpush.bf16.msra.mxu2 %v3764_v39  ;;  %2624 = vmatpush.bf16.msrb.mxu0 %v3780_v53 }
 0x339   :  { %2591 = vmatpush.bf16.msra.mxu1 %v3750_v5  ;;  %2617 = vmatpush.bf16.msra.mxu3 %v3766_v14 }
 0x33c   :  { %2599 = vmatpush.bf16.msra.mxu2 %v3763_v40  ;;  %2625 = vmatpush.bf16.msrb.mxu0 %v3779_v60 }
 0x340   :  { %2600 = vmatpush.bf16.msra.mxu2 %v3762_v46  ;;  %2626 = vmatpush.bf16.msrb.mxu0 %v3778_v0 }
 0x343   :  { %2285 = vmatmul.bf16.vlgmr.msrb.gmra.mxu2 %v1817_v31  ;;  %2311 = vmatmul.bf16.vlgmr.msra.gmra.mxu0 %v1817_v31 }
 0x344   :  { %2601 = vmatpush.bf16.msra.mxu2 %v3761_v47  ;;  %2627 = vmatpush.bf16.msrb.mxu0 %v3777_v2 }
 0x348   :  { %2602 = vmatpush.bf16.msra.mxu2 %v3760_v48  ;;  %2628 = vmatpush.bf16.msrb.mxu0 %v3776_v7  ;;  %v3791_v48 = vld [vmem:[%s4940_s10] ss:$0 sm:$0xff] }
 0x34c   :  { %2603 = vmatpush.bf16.msra.mxu2 %v3759_v56  ;;  %2629 = vmatpush.bf16.msrb.mxu0 %v3775_v8 }
 0x350   :  { %2604 = vmatpush.bf16.msra.mxu2 %v3758_v34  ;;  %2630 = vmatpush.bf16.msrb.mxu0 %v3774_v11 }
 0x398   :  { %v2221_v22 = vpop.f32.mrf.mxu1 }
 0x399   :  { %v2222_v20 = vadd.f32 %v2221_v22, %v1884_v9 }
 0x39e   :  { %v2247_v41 = vpop.f32.mrf.mxu3 }
 0x39f   :  { %v2248_v17 = vadd.f32 %v2247_v41, %v1885_v15 }
 0x3a0   :  { %v2223_v4 = vpop.f32.mrf.mxu1 }
 0x3a6   :  { %v2249_v32 = vpop.f32.mrf.mxu3 }
 0x3a8   :  { %v2273_v13 = vpop.f32.mrf.mxu1 }
 0x3a9   :  { %v2274_v57 = vadd.f32 %v2273_v13, %v1886_v29 }
 0x3ae   :  { %v2299_v16 = vpop.f32.mrf.mxu3 }
 0x3af   :  { %v2300_v27 = vadd.f32 %v2299_v16, %v1887_v52 }
 0x3b0   :  { %v2260_v3 = vpop.f32.mrf.mxu0  ;;  %v2275_v18 = vpop.f32.mrf.mxu1 }
 0x3b1   :  { %v2261_v44 = vadd.f32 %v2260_v3, %v2248_v17 }
 0x3b3   :  { %v2317_v19 = vmax.f32 %v2261_v44, 0.0 }
 0x3b5   :  { %v2321_v51 = vpack.c.bf16 %v2317_v19, %v2317_v19 }
 0x3b6   :  { %v2234_v21 = vpop.f32.mrf.mxu2  ;;  %v2301_v49 = vpop.f32.mrf.mxu3 }
 0x3b7   :  { %v2235_v10 = vadd.f32 %v2234_v21, %v2222_v20  ;;  %2605 = vmatmul.bf16.vlgmr.msra.gmra.mxu2 %v2321_v51 }
 0x3b8   :  { %v2262_v23 = vpop.f32.mrf.mxu0 }
 0x3b9   :  { %v2316_v24 = vmax.f32 %v2235_v10, 0.0 }
 0x3bb   :  { %v2320_v50 = vpack.c.bf16 %v2316_v24, %v2316_v24 }
 0x3bd   :  { %2592 = vmatmul.bf16.vlgmr.msra.gmra.mxu1 %v2320_v50 }
 0x3be   :  { %v2236_v26 = vpop.f32.mrf.mxu2 }
 0x3c0   :  { %v2312_v28 = vpop.f32.mrf.mxu0 }
 0x3c1   :  { %v2313_v30 = vadd.f32 %v2312_v28, %v2300_v27 }
 0x3c3   :  { %v2319_v37 = vmax.f32 %v2313_v30, 0.0 }
 0x3c5   :  { %v2323_v38 = vpack.c.bf16 %v2319_v37, %v2319_v37 }
 0x3c6   :  { %v2286_v31 = vpop.f32.mrf.mxu2 }
 0x3c7   :  { %v2287_v59 = vadd.f32 %v2286_v31, %v2274_v57  ;;  %2631 = vmatmul.bf16.vlgmr.msrb.gmra.mxu0 %v2323_v38 }
 0x3c8   :  { %v2314_v39 = vpop.f32.mrf.mxu0 }
 0x3c9   :  { %v2318_v45 = vmax.f32 %v2287_v59, 0.0 }
 0x3cb   :  { %v2322_v40 = vpack.c.bf16 %v2318_v45, %v2318_v45 }
 0x3cd   :  { %2618 = vmatmul.bf16.vlgmr.msra.gmra.mxu3 %v2322_v40 }
 0x3ce   :  { %v2288_v25 = vpop.f32.mrf.mxu2 }
 0x43a   :  { %v2593_v46 = vpop.f32.mrf.mxu1  ;;  %v2606_v33 = vpop.f32.mrf.mxu2 }
 0x43b   :  { %v2594_v53 = vadd.f32 %v3791_v48, %v2593_v46 }
 0x43d   :  { %v2607_v55 = vadd.f32 %v2606_v33, %v2594_v53 }
 0x442   :  { %v2595_v47 = vpop.f32.mrf.mxu1  ;;  %v2608_v58 = vpop.f32.mrf.mxu2 }
 0x444   :  { %v2632_v35 = vpop.f32.mrf.mxu0 }
 0x44c   :  { %v2634_v54 = vpop.f32.mrf.mxu0 }
 0x450   :  { %v2619_v56 = vpop.f32.mrf.mxu3 }
 0x451   :  { %v2620_v60 = vadd.f32 %v2619_v56, %v2607_v55 }
 0x453   :  { %v2633_v61 = vadd.f32 %v2632_v35, %v2620_v60 }
 0x455   :  { %2636 = vst [vmem:[%s4943_s11] sm:$0x3] %v2633_v61 }
 0x458   :  { %v2621_v62 = vpop.f32.mrf.mxu3 }

</bundles_post_ra>
